<compile_context>
chip_gen: v5e
topology: v5e:2x2
jax: 0.10.0
libtpu: 0.0.40
codegen_flags: <defaults>
</compile_context>

<pallas_src>
import functools
import math

import numpy as np

import jax
import jax.numpy as jnp
from jax import lax
from jax.experimental import pallas as pl
from jax.experimental.pallas import tpu as pltpu


# ----------------------------------------------------------------------------
# Per-generation hardware budgets.
# ----------------------------------------------------------------------------
@functools.lru_cache(maxsize=None)
def _vmem_capacity_bytes() -> int:
    try:
        cap = int(pltpu.get_tpu_info().vmem_capacity_bytes)
    except Exception:
        cap = 64 * 2**20  # most restrictive current gen (v7x per-TC VMEM)
    return max(16 * 2**20, min(cap, 128 * 2**20))  # sanity clamp


@functools.lru_cache(maxsize=None)
def _vmem_limit_bytes() -> int:
    # Raised scoped-VMEM limit handed to Mosaic (defaults are only 16/32 MiB).
    return int(_vmem_capacity_bytes() * 0.75)


@functools.lru_cache(maxsize=None)
def _block_budget_bytes() -> int:
    # Budget used when picking block sizes; leaves headroom below the limit.
    return int(_vmem_capacity_bytes() * 0.5)


@functools.lru_cache(maxsize=None)
def _tensorcores_per_chip() -> int:
    # v7x exposes 2 TensorCores behind one device; v5e/v6e are single-TC.
    try:
        kind = jax.devices()[0].device_kind.lower()
    except Exception:
        return 1
    return 2 if "7" in kind else 1


# ----------------------------------------------------------------------------
# Host-side weight construction (numpy, cached -> no per-call device ops).
# ----------------------------------------------------------------------------
@functools.lru_cache(maxsize=None)
def _interp_matrix_np(out_size: int, in_size: int) -> np.ndarray:
    """1-D linear interpolation matrix, align_corners=True (PyTorch semantics)."""
    W = np.zeros((out_size, in_size), dtype=np.float32)
    if out_size == 1 or in_size == 1:
        W[:, 0] = 1.0
        return W
    src = np.arange(out_size, dtype=np.float64) * (in_size - 1) / (out_size - 1)
    i0 = np.clip(np.floor(src).astype(np.int64), 0, in_size - 1)
    i1 = np.minimum(i0 + 1, in_size - 1)
    w1 = (src - i0).astype(np.float32)
    w0 = (1.0 - w1).astype(np.float32)
    rows = np.arange(out_size)
    np.add.at(W, (rows, i0), w0)
    np.add.at(W, (rows, i1), w1)
    return W


@functools.lru_cache(maxsize=None)
def _fused_weight(h_out, h_in, w_out, w_in, factor) -> jax.Array:
    # Rescale folded in exactly: y = factor * (Wh @ x @ Ww^T)  (linear map, so
    # both PyTorch branch orders collapse to this).
    wh = _interp_matrix_np(h_out, h_in) * np.float32(factor)
    ww = _interp_matrix_np(w_out, w_in)
    # vec_row(Wh x Ww^T) = vec_row(x) @ kron(Wh^T, Ww^T)
    return jnp.asarray(np.kron(wh.T, ww.T).astype(np.float32))


@functools.lru_cache(maxsize=None)
def _separable_weights(h_out, h_in, w_out, w_in, factor):
    wh = jnp.asarray(_interp_matrix_np(h_out, h_in) * np.float32(factor))
    wwt = jnp.asarray(np.ascontiguousarray(_interp_matrix_np(w_out, w_in).T))
    return wh, wwt


# ----------------------------------------------------------------------------
# Block-size selection.
# ----------------------------------------------------------------------------
def _largest_divisor(n, cap, *, mult_of_8=False):
    for b in range(min(cap, n), 0, -1):
        if n % b:
            continue
        if mult_of_8 and b % 8 != 0 and b != n:
            continue
        return b
    return None


_MIN_MULTI_STEP_BLOCK_BYTES = 1 << 20  # only split work if blocks stay >= 1 MiB


def _prefer_multi_step(nc, b, per_slice_bytes, *, mult_of_8):
    """On multi-TensorCore chips (v7x) prefer an even number (>=2) of grid
    steps so both cores get work — but only when each step keeps a large block
    (per-step overhead ~0.35 us). Single-TC chips keep the single big block."""
    if _tensorcores_per_chip() < 2 or b != nc or nc < 2:
        return b
    b2 = _largest_divisor(nc, max(nc // 2, 1), mult_of_8=mult_of_8)
    if (b2 is not None and (nc // b2) % 2 == 0
            and b2 * per_slice_bytes >= _MIN_MULTI_STEP_BLOCK_BYTES):
        return b2
    return b


def _pick_fused_batch(nc, hw_in, hw_out, in_item, out_item, budget):
    # The fused weight is charged double-buffered so the kernel still fits even
    # if the Buffered(1) request is not honoured by this jax/Mosaic version.
    avail = budget - 2 * 4 * hw_in * hw_out
    per_slice = 2 * (in_item * hw_in + out_item * hw_out)  # double-buffered in/out rows
    if avail < per_slice:
        return None
    b = _largest_divisor(nc, avail // per_slice, mult_of_8=True)
    if b is None:
        return None
    return _prefer_multi_step(nc, b, per_slice, mult_of_8=True)


def _pick_separable_batch(nc, h_in, w_in, h_out, w_out, in_item, out_item, budget):
    weights = 2 * 4 * (h_out * h_in + w_in * w_out)   # resident weights (charged 2x)
    scratch = 4 * (h_in * w_out + h_out * w_out)      # in-kernel f32 temporaries
    per_slice = 2 * (in_item * h_in * w_in + out_item * h_out * w_out)
    avail = max(budget - weights - scratch, per_slice)  # always allow b = 1
    b = _largest_divisor(nc, max(avail // per_slice, 1)) or 1
    return _prefer_multi_step(nc, b, per_slice, mult_of_8=False)


# ----------------------------------------------------------------------------
# Kernels.
# ----------------------------------------------------------------------------
def _resize_fused_kernel(x_ref, kt_ref, o_ref):
    # x_ref: (B, H_in*W_in)   lane-dense input rows (original dtype, e.g. bf16)
    # kt_ref: (H_in*W_in, H_out*W_out) fused f32 weight (rescale folded in), resident
    # o_ref: (B, H_out*W_out) lane-dense output rows
    o_ref[...] = jnp.dot(
        x_ref[...], kt_ref[...], preferred_element_type=jnp.float32
    ).astype(o_ref.dtype)


def _resize_separable_kernel(x_ref, wh_ref, wwt_ref, o_ref):
    # x_ref: (B, H_in, W_in); wh_ref: (H_out, H_in) with rescale folded in;
    # wwt_ref: (W_in, W_out) pre-transposed; o_ref: (B, H_out, W_out).
    # Per-slice 2-D matmuls; no in-kernel reshape/transpose and no block-diag
    # zero padding, so b is limited only by the streamed data blocks.
    b = x_ref.shape[0]

    def body(i, carry):
        t = jnp.dot(x_ref[i], wwt_ref[...], preferred_element_type=jnp.float32)
        y = jnp.dot(wh_ref[...], t, preferred_element_type=jnp.float32)
        o_ref[i] = y.astype(o_ref.dtype)
        return carry

    lax.fori_loop(0, b, body, 0, unroll=(b <= 8))


def _run_with_single_buffered_weights(run):
    """Ask for pipeline_mode=pl.Buffered(1) on the constant-weight operands
    (constant index_map -> double buffering only wastes VMEM); fall back to the
    default pipelining if this jax/Mosaic build rejects it."""
    try:
        return run(True)
    except Exception:
        return run(False)


# ----------------------------------------------------------------------------
# Wrapper.
# ----------------------------------------------------------------------------
_FUSED_WEIGHT_SMALL_BYTES = 2 * 2**20  # below this the kron weight's HBM cost is negligible
_FUSED_TRAFFIC_RATIO = 2.0             # otherwise require weight reads <~ 2x field traffic


def resize_transform(x: jax.Array, vel_resize: float, *, path: str = "auto") -> jax.Array:
    """Pallas implementation of ResizeTransform.forward for ndims=2 (bilinear).

    x: (N, C, H, W).  Returns (N, C, floor(H*factor), floor(W*factor)) in x.dtype.
    path: "auto" | "fused" | "separable".
    """
    factor = 1.0 / vel_resize
    if factor == 1.0:
        return x  # module is identity when factor == 1

    N, C, H_in, W_in = x.shape
    # Mirror PyTorch's F.interpolate output-size computation: floor(in * factor).
    H_out = int(math.floor(H_in * factor))
    W_out = int(math.floor(W_in * factor))
    nc = N * C
    hw_in, hw_out = H_in * W_in, H_out * W_out
    in_item = out_item = np.dtype(x.dtype).itemsize  # stream x in its own dtype (no f32 upcast)

    budget = _block_budget_bytes()
    vmem_limit = _vmem_limit_bytes()
    compiler_params = pltpu.CompilerParams(
        dimension_semantics=("parallel",), vmem_limit_bytes=vmem_limit)

    weight_bytes = 4 * hw_in * hw_out
    data_bytes = nc * (hw_in * in_item + hw_out * out_item)

    b_fused = _pick_fused_batch(nc, hw_in, hw_out, in_item, out_item, budget)
    if path == "fused":
        if b_fused is None:
            raise ValueError("fused path does not fit in VMEM for this problem size")
        use_fused = True
    elif path == "separable":
        use_fused = False
    else:
        # Memory-bound op: only pay for the dense kron weight when its HBM reads
        # are negligible in absolute terms or comparable to the field traffic.
        use_fused = b_fused is not None and (
            weight_bytes <= _FUSED_WEIGHT_SMALL_BYTES
            or weight_bytes <= _FUSED_TRAFFIC_RATIO * data_bytes)

    if use_fused:
        b = b_fused
        kt = _fused_weight(H_out, H_in, W_out, W_in, factor)
        x2 = x.reshape(nc, hw_in)  # free reshape, contiguous lane-dense rows
        cost = pl.CostEstimate(
            flops=2 * nc * hw_in * hw_out,
            transcendentals=0,
            bytes_accessed=data_bytes + weight_bytes)

        def run(single_buffer_weights):
            wkw = ({"pipeline_mode": pl.Buffered(buffer_count=1)}
                   if single_buffer_weights else {})
            return pl.pallas_call(
                _resize_fused_kernel,
                out_shape=jax.ShapeDtypeStruct((nc, hw_out), x.dtype),
                grid_spec=pltpu.PrefetchScalarGridSpec(
                    num_scalar_prefetch=0,
                    grid=(nc // b,),
                    in_specs=[
                        pl.BlockSpec((b, hw_in), lambda i: (i, 0)),
                        pl.BlockSpec((hw_in, hw_out), lambda i: (0, 0), **wkw),
                    ],
                    out_specs=pl.BlockSpec((b, hw_out), lambda i: (i, 0)),
                ),
                compiler_params=compiler_params,
                cost_estimate=cost,
            )(x2, kt)

        out2 = _run_with_single_buffered_weights(run)
        return out2.reshape(N, C, H_out, W_out)

    # ---- separable fallback: per-slice MXU matmuls, streamed blocks of b slices ----
    b = _pick_separable_batch(nc, H_in, W_in, H_out, W_out, in_item, out_item, budget)
    wh, wwt = _separable_weights(H_out, H_in, W_out, W_in, factor)
    x3 = x.reshape(nc, H_in, W_in)  # free reshape
    cost = pl.CostEstimate(
        flops=2 * nc * (H_in * W_in * W_out + H_out * H_in * W_out),
        transcendentals=0,
        bytes_accessed=data_bytes + 4 * (H_out * H_in + W_in * W_out))

    def run(single_buffer_weights):
        wkw = ({"pipeline_mode": pl.Buffered(buffer_count=1)}
               if single_buffer_weights else {})
        return pl.pallas_call(
            _resize_separable_kernel,
            out_shape=jax.ShapeDtypeStruct((nc, H_out, W_out), x.dtype),
            grid_spec=pltpu.PrefetchScalarGridSpec(
                num_scalar_prefetch=0,
                grid=(nc // b,),
                in_specs=[
                    pl.BlockSpec((b, H_in, W_in), lambda i: (i, 0, 0)),
                    pl.BlockSpec((H_out, H_in), lambda i: (0, 0), **wkw),
                    pl.BlockSpec((W_in, W_out), lambda i: (0, 0), **wkw),
                ],
                out_specs=pl.BlockSpec((b, H_out, W_out), lambda i: (i, 0, 0)),
            ),
            compiler_params=compiler_params,
            cost_estimate=cost,
        )(x3, wh, wwt)

    out3 = _run_with_single_buffered_weights(run)
    return out3.reshape(N, C, H_out, W_out)


# ----------------------------------------------------------------------------
# Pure-JAX reference mirroring the PyTorch module (branch order preserved).
# ----------------------------------------------------------------------------
def _reference(x: jax.Array, vel_resize: float) -> jax.Array:
    factor = 1.0 / vel_resize
    if factor == 1.0:
        return x
    N, C, H_in, W_in = x.shape
    H_out = int(math.floor(H_in * factor))
    W_out = int(math.floor(W_in * factor))
    wh = jnp.asarray(_interp_matrix_np(H_out, H_in))
    ww = jnp.asarray(_interp_matrix_np(W_out, W_in))
    xf = x.astype(jnp.float32)
    if factor > 1.0:
        xf = xf * factor                       # PyTorch: scale, then interpolate
    y = jnp.einsum("oh,nchw->ncow", wh, xf)
    y = jnp.einsum("pw,ncow->ncop", ww, y)
    if factor < 1.0:
        y = y * factor                         # PyTorch: interpolate, then scale
    return y.astype(x.dtype)


if __name__ == "__main__":
    key = jax.random.PRNGKey(0)
    # Velocity field: channels == ndims == 2, NCHW like the PyTorch module.
    N, C, H, W = 8, 2, 16, 16
    x = jax.random.normal(key, (N, C, H, W), dtype=jnp.float32)

    # factor = 2.0 -> scale-then-interpolate branch (upsample).
    ref_up = _reference(x, 0.5)
    for p in ("auto", "fused", "separable"):
        out = jax.block_until_ready(resize_transform(x, 0.5, path=p))
        assert out.shape == (N, C, 32, 32), (p, out.shape)
        assert jnp.allclose(out, ref_up, atol=1e-5, rtol=1e-5), f"{p} path mismatch (up)"

    # factor = 0.5 -> interpolate-then-scale branch (downsample).
    ref_dn = _reference(x, 2.0)
    for p in ("auto", "separable"):
        out = jax.block_until_ready(resize_transform(x, 2.0, path=p))
        assert out.shape == (N, C, 8, 8), (p, out.shape)
        assert jnp.allclose(out, ref_dn, atol=1e-5, rtol=1e-5), f"{p} path mismatch (down)"

    # bf16 fields stream in bf16 (weights stay f32, dots accumulate in f32).
    xb = x.astype(jnp.bfloat16)
    ref_b = _reference(xb, 0.5)
    out_b = jax.block_until_ready(resize_transform(xb, 0.5))
    assert out_b.dtype == jnp.bfloat16 and out_b.shape == (N, C, 32, 32)
    assert jnp.allclose(out_b.astype(jnp.float32), ref_b.astype(jnp.float32),
                        atol=5e-2, rtol=5e-2), "bf16 path mismatch"

    print("KERNEL_OK")
</pallas_src>

<mosaic_0001>
module attributes {stable_mosaic.version = 11 : i64} {
  func.func @_resize_fused_kernel(%arg0: i32, %arg1: memref<16x256xf32, #tpu.memory_space<vmem>>, %arg2: memref<256x1024xf32, #tpu.memory_space<vmem>>, %arg3: memref<16x1024xf32, #tpu.memory_space<vmem>>) attributes {dimension_semantics = [#tpu.dimension_semantics<parallel>], iteration_bounds = array<i64: 1>, scalar_prefetch = 0 : i64, scratch_operands = 0 : i64, tpu.core_type = #tpu.core_type<tc>, window_params = [{transform_indices = @transform_0, window_bounds = array<i64: 16, 256>}, {pipeline_mode = #tpu.pipeline_mode<synchronous>, transform_indices = @transform_1, window_bounds = array<i64: 256, 1024>}, {transform_indices = @transform_2, window_bounds = array<i64: 16, 1024>}]} {
    %c0 = arith.constant 0 : index
    %c0_0 = arith.constant 0 : index
    %0 = vector.load %arg1[%c0, %c0_0] : memref<16x256xf32, #tpu.memory_space<vmem>>, vector<16x256xf32>
    %c0_1 = arith.constant 0 : index
    %c0_2 = arith.constant 0 : index
    %1 = vector.load %arg2[%c0_1, %c0_2] : memref<256x1024xf32, #tpu.memory_space<vmem>>, vector<256x1024xf32>
    %cst = arith.constant dense<0.000000e+00> : vector<16x1024xf32>
    %2 = tpu.matmul %0, %1, %cst {dimension_numbers = #tpu.dot_dimension_numbers<[1], [0], [0], [1], [0, 0, 1, 1], [], []>} : vector<16x256xf32>, vector<256x1024xf32>, vector<16x1024xf32> -> vector<16x1024xf32>
    %c0_3 = arith.constant 0 : index
    %c0_4 = arith.constant 0 : index
    %3 = vector.load %arg3[%c0_3, %c0_4] : memref<16x1024xf32, #tpu.memory_space<vmem>>, vector<16x1024xf32>
    tpu.vector_store %arg3[%c0_3, %c0_4], %2 {strides = array<i32>} : memref<16x1024xf32, #tpu.memory_space<vmem>>, vector<16x1024xf32>,
    return
  }
  func.func @transform_0(%arg0: i32) -> (i32, i32) {
    %c0_i32 = arith.constant 0 : i32
    %c0_i32_0 = arith.constant 0 : i32
    return %arg0, %c0_i32 : i32, i32
  }
  func.func @transform_1(%arg0: i32) -> (i32, i32) {
    %c0_i32 = arith.constant 0 : i32
    %c0_i32_0 = arith.constant 0 : i32
    %c0_i32_1 = arith.constant 0 : i32
    return %c0_i32, %c0_i32_0 : i32, i32
  }
  func.func @transform_2(%arg0: i32) -> (i32, i32) {
    %c0_i32 = arith.constant 0 : i32
    %c0_i32_0 = arith.constant 0 : i32
    return %arg0, %c0_i32 : i32, i32
  }
}

module attributes {stable_mosaic.version = 11 : i64} {
  func.func @_resize_fused_kernel(%arg0: i32, %arg1: memref<16x256xf32, #tpu.memory_space<vmem>>, %arg2: memref<256x1024xf32, #tpu.memory_space<vmem>>, %arg3: memref<16x1024xf32, #tpu.memory_space<vmem>>) attributes {dimension_semantics = [#tpu.dimension_semantics<parallel>], iteration_bounds = array<i64: 1>, scalar_prefetch = 0 : i64, scratch_operands = 0 : i64, tpu.core_type = #tpu.core_type<tc>, window_params = [{transform_indices = @transform_0, window_bounds = array<i64: 16, 256>}, {pipeline_mode = #tpu.pipeline_mode<synchronous>, transform_indices = @transform_1, window_bounds = array<i64: 256, 1024>}, {transform_indices = @transform_2, window_bounds = array<i64: 16, 1024>}]} {
    %c0 = arith.constant 0 : index
    %c0_0 = arith.constant 0 : index
    %0 = vector.load %arg1[%c0, %c0_0] : memref<16x256xf32, #tpu.memory_space<vmem>>, vector<16x256xf32>
    %c0_1 = arith.constant 0 : index
    %c0_2 = arith.constant 0 : index
    %1 = vector.load %arg2[%c0_1, %c0_2] : memref<256x1024xf32, #tpu.memory_space<vmem>>, vector<256x1024xf32>
    %cst = arith.constant dense<0.000000e+00> : vector<16x1024xf32>
    %2 = tpu.matmul %0, %1, %cst {dimension_numbers = #tpu.dot_dimension_numbers<[1], [0], [0], [1], [0, 0, 1, 1], [], []>} : vector<16x256xf32>, vector<256x1024xf32>, vector<16x1024xf32> -> vector<16x1024xf32>
    %c0_3 = arith.constant 0 : index
    %c0_4 = arith.constant 0 : index
    %3 = vector.load %arg3[%c0_3, %c0_4] : memref<16x1024xf32, #tpu.memory_space<vmem>>, vector<16x1024xf32>
    tpu.vector_store %arg3[%c0_3, %c0_4], %2 {strides = array<i32>} : memref<16x1024xf32, #tpu.memory_space<vmem>>, vector<16x1024xf32>,
    return
  }
  func.func @transform_0(%arg0: i32) -> (i32, i32) {
    %c0_i32 = arith.constant 0 : i32
    %c0_i32_0 = arith.constant 0 : i32
    return %arg0, %c0_i32 : i32, i32
  }
  func.func @transform_1(%arg0: i32) -> (i32, i32) {
    %c0_i32 = arith.constant 0 : i32
    %c0_i32_0 = arith.constant 0 : i32
    %c0_i32_1 = arith.constant 0 : i32
    return %c0_i32, %c0_i32_0 : i32, i32
  }
  func.func @transform_2(%arg0: i32) -> (i32, i32) {
    %c0_i32 = arith.constant 0 : i32
    %c0_i32_0 = arith.constant 0 : i32
    return %arg0, %c0_i32 : i32, i32
  }
}

</mosaic_0001>

<bundles_post_ra>
// kernel: tpu_custom_call.1
= control target key start
LH: loop header
LB: loop body
LE: loop exit
PB: predicated region body
PF: predicated region fallthrough
CT: control target
= control target key end

     0   :  { %7 = vsyncpa [#allocation3], 0  ;;  %s870_s0 = inlined_call_operand.hbm [shape: f32[16,256], index: 0, kind: input, shape index: {}]   ;;  %s871_s1 = inlined_call_operand.hbm [shape: f32[256,1024], index: 1, kind: input, shape index: {}]   ;;  %s872_s2 = inlined_call_operand.hbm [shape: f32[16,1024], index: 2, kind: output, shape index: {}]  }
   0x1   :  { %8 = vsyncpa [#allocation6], 0 }
   0x2   :  { %9 = vsyncpa [#allocation4], 0  ;;  %s14_s11 = sshll.u32 %s870_s0, 4  ;;  %s793_s12 = smov [#allocation2]   ;;  %s15_s11 = int_to_ptr.hbm [resolvable:$true] %s14_s11 }
   0x3   :  { %s16_s13 = sshll.u32 %s793_s12, 4  ;;  %s27_s16 = sshll.u32 %s871_s1, 4  ;;  %s17_s13 = int_to_ptr.vmem [resolvable:$true] %s16_s13  ;;  %s28_s16 = int_to_ptr.hbm [resolvable:$true] %s27_s16 }
   0x4   :  { %s794_s17 = smov 256   ;;  %s795_s18 = smov 16  }
   0x5   :  { %22 = dma.hbm_to_vmem [thread:$0]  %s15_s11, 512, %s17_s13, [#allocation3], %s794_s17, %s794_s17, %s795_s18  }
   0x6   :  { %s796_s19 = smov [#allocation5]   ;;  %s797_s21 = smov 1024  }
   0x7   :  { %s29_s20 = sshll.u32 %s796_s19, 4  ;;  %s798_s22 = smov 64   ;;  %s30_s20 = int_to_ptr.vmem [resolvable:$true] %s29_s20 }
   0x8   :  { %35 = dma.hbm_to_vmem [thread:$0]  %s28_s16, 32768, %s30_s20, [#allocation6], %s797_s21, %s797_s21, %s798_s22  }
   0x9   :  { %787 = dma.done.wait [#allocation3], 512  }
   0xa   :  { %788 = vsyncadd [#allocation3], 4294966784 }
   0xb   :  { %789 = dma.done.wait [#allocation6], 32768  }
   0xc   :  { %790 = vsyncadd [#allocation6], 4294934528  ;;  %v169_v0 = vld [vmem:[#allocation5 + $0x3c8] sm:$0xff]  ;;  %v168_v6 = vld [vmem:[#allocation5 + $0x3c0] sm:$0xff]  ;;  %s799_s0 = smov [#allocation7]   ;;  %s694_s25 = sshll.u32 %s872_s2, 4  ;;  %s695_s25 = int_to_ptr.hbm [resolvable:$true] %s694_s25 }
   0xd   :  { %v297_v1 = vld [vmem:[#allocation5 + $0x7c8] sm:$0xff]  ;;  %350 = vmatpush.msra.mxu2 %v169_v0  ;;  %v296_v7 = vld [vmem:[#allocation5 + $0x7c0] sm:$0xff]  ;;  %304 = vmatpush.msra.mxu0 %v168_v6  ;;  %v171_v60 = vld [vmem:[#allocation5 + $0x3d8] sm:$0xff]  ;;  %s692_s1 = sshll.u32 %s799_s0, 4  ;;  %s693_s1 = int_to_ptr.vmem [resolvable:$true] %s692_s1 }
   0xe   :  { %v161_v2 = vld [vmem:[#allocation5 + $0x388] sm:$0xff]  ;;  %373 = vmatpush.msra.mxu3 %v297_v1  ;;  %v160_v8 = vld [vmem:[#allocation5 + $0x380] sm:$0xff]  ;;  %327 = vmatpush.msra.mxu1 %v296_v7  ;;  %v299_v61 = vld [vmem:[#allocation5 + $0x7d8] sm:$0xff] }
   0xf   :  { %v289_v3 = vld [vmem:[#allocation5 + $0x788] sm:$0xff]  ;;  %351 = vmatpush.msra.mxu2 %v161_v2  ;;  %v288_v9 = vld [vmem:[#allocation5 + $0x780] sm:$0xff]  ;;  %305 = vmatpush.msra.mxu0 %v160_v8  ;;  %v163_v0 = vld [vmem:[#allocation5 + $0x398] sm:$0xff] }
  0x10   :  { %v153_v4 = vld [vmem:[#allocation5 + $0x348] sm:$0xff]  ;;  %374 = vmatpush.msra.mxu3 %v289_v3  ;;  %v152_v12 = vld [vmem:[#allocation5 + $0x340] sm:$0xff]  ;;  %328 = vmatpush.msra.mxu1 %v288_v9  ;;  %v291_v1 = vld [vmem:[#allocation5 + $0x798] sm:$0xff] }
  0x11   :  { %v281_v5 = vld [vmem:[#allocation5 + $0x748] sm:$0xff]  ;;  %352 = vmatpush.msra.mxu2 %v153_v4  ;;  %v280_v13 = vld [vmem:[#allocation5 + $0x740] sm:$0xff]  ;;  %306 = vmatpush.msra.mxu0 %v152_v12  ;;  %v155_v4 = vld [vmem:[#allocation5 + $0x358] sm:$0xff] }
  0x12   :  { %v145_v10 = vld [vmem:[#allocation5 + $0x308] sm:$0xff]  ;;  %375 = vmatpush.msra.mxu3 %v281_v5  ;;  %v144_v16 = vld [vmem:[#allocation5 + $0x300] sm:$0xff]  ;;  %329 = vmatpush.msra.mxu1 %v280_v13  ;;  %v283_v5 = vld [vmem:[#allocation5 + $0x758] sm:$0xff] }
  0x13   :  { %v273_v11 = vld [vmem:[#allocation5 + $0x708] sm:$0xff]  ;;  %353 = vmatpush.msra.mxu2 %v145_v10  ;;  %v272_v17 = vld [vmem:[#allocation5 + $0x700] sm:$0xff]  ;;  %307 = vmatpush.msra.mxu0 %v144_v16  ;;  %v170_v6 = vld [vmem:[#allocation5 + $0x3d0] sm:$0xff] }
  0x14   :  { %v137_v14 = vld [vmem:[#allocation5 + $0x2c8] sm:$0xff]  ;;  %376 = vmatpush.msra.mxu3 %v273_v11  ;;  %v136_v20 = vld [vmem:[#allocation5 + $0x2c0] sm:$0xff]  ;;  %330 = vmatpush.msra.mxu1 %v272_v17  ;;  %v298_v7 = vld [vmem:[#allocation5 + $0x7d0] sm:$0xff] }
  0x15   :  { %v265_v15 = vld [vmem:[#allocation5 + $0x6c8] sm:$0xff]  ;;  %354 = vmatpush.msra.mxu2 %v137_v14  ;;  %v264_v21 = vld [vmem:[#allocation5 + $0x6c0] sm:$0xff]  ;;  %308 = vmatpush.msra.mxu0 %v136_v20  ;;  %v147_v8 = vld [vmem:[#allocation5 + $0x318] sm:$0xff] }
  0x16   :  { %v129_v18 = vld [vmem:[#allocation5 + $0x288] sm:$0xff]  ;;  %377 = vmatpush.msra.mxu3 %v265_v15  ;;  %v128_v24 = vld [vmem:[#allocation5 + $0x280] sm:$0xff]  ;;  %331 = vmatpush.msra.mxu1 %v264_v21  ;;  %v275_v9 = vld [vmem:[#allocation5 + $0x718] sm:$0xff] }
  0x17   :  { %v257_v19 = vld [vmem:[#allocation5 + $0x688] sm:$0xff]  ;;  %355 = vmatpush.msra.mxu2 %v129_v18  ;;  %v256_v25 = vld [vmem:[#allocation5 + $0x680] sm:$0xff]  ;;  %309 = vmatpush.msra.mxu0 %v128_v24  ;;  %v162_v10 = vld [vmem:[#allocation5 + $0x390] sm:$0xff] }
  0x18   :  { %v121_v22 = vld [vmem:[#allocation5 + $0x248] sm:$0xff]  ;;  %378 = vmatpush.msra.mxu3 %v257_v19  ;;  %v120_v28 = vld [vmem:[#allocation5 + $0x240] sm:$0xff]  ;;  %332 = vmatpush.msra.mxu1 %v256_v25  ;;  %v290_v11 = vld [vmem:[#allocation5 + $0x790] sm:$0xff] }
  0x19   :  { %v249_v23 = vld [vmem:[#allocation5 + $0x648] sm:$0xff]  ;;  %356 = vmatpush.msra.mxu2 %v121_v22  ;;  %v248_v29 = vld [vmem:[#allocation5 + $0x640] sm:$0xff]  ;;  %310 = vmatpush.msra.mxu0 %v120_v28  ;;  %v139_v12 = vld [vmem:[#allocation5 + $0x2d8] sm:$0xff] }
  0x1a   :  { %v113_v26 = vld [vmem:[#allocation5 + $0x208] sm:$0xff]  ;;  %379 = vmatpush.msra.mxu3 %v249_v23  ;;  %v112_v32 = vld [vmem:[#allocation5 + $0x200] sm:$0xff]  ;;  %333 = vmatpush.msra.mxu1 %v248_v29  ;;  %v267_v13 = vld [vmem:[#allocation5 + $0x6d8] sm:$0xff] }
  0x1b   :  { %v241_v27 = vld [vmem:[#allocation5 + $0x608] sm:$0xff]  ;;  %357 = vmatpush.msra.mxu2 %v113_v26  ;;  %v240_v33 = vld [vmem:[#allocation5 + $0x600] sm:$0xff]  ;;  %311 = vmatpush.msra.mxu0 %v112_v32  ;;  %v154_v14 = vld [vmem:[#allocation5 + $0x350] sm:$0xff] }
  0x1c   :  { %v105_v30 = vld [vmem:[#allocation5 + $0x1c8] sm:$0xff]  ;;  %380 = vmatpush.msra.mxu3 %v241_v27  ;;  %v104_v36 = vld [vmem:[#allocation5 + $0x1c0] sm:$0xff]  ;;  %334 = vmatpush.msra.mxu1 %v240_v33  ;;  %v282_v15 = vld [vmem:[#allocation5 + $0x750] sm:$0xff] }
  0x1d   :  { %v233_v31 = vld [vmem:[#allocation5 + $0x5c8] sm:$0xff]  ;;  %358 = vmatpush.msra.mxu2 %v105_v30  ;;  %v232_v37 = vld [vmem:[#allocation5 + $0x5c0] sm:$0xff]  ;;  %312 = vmatpush.msra.mxu0 %v104_v36  ;;  %v131_v16 = vld [vmem:[#allocation5 + $0x298] sm:$0xff] }
  0x1e   :  { %v97_v34 = vld [vmem:[#allocation5 + $0x188] sm:$0xff]  ;;  %381 = vmatpush.msra.mxu3 %v233_v31  ;;  %v96_v40 = vld [vmem:[#allocation5 + $0x180] sm:$0xff]  ;;  %335 = vmatpush.msra.mxu1 %v232_v37  ;;  %v259_v17 = vld [vmem:[#allocation5 + $0x698] sm:$0xff] }
  0x1f   :  { %v225_v35 = vld [vmem:[#allocation5 + $0x588] sm:$0xff]  ;;  %359 = vmatpush.msra.mxu2 %v97_v34  ;;  %v224_v41 = vld [vmem:[#allocation5 + $0x580] sm:$0xff]  ;;  %313 = vmatpush.msra.mxu0 %v96_v40  ;;  %v146_v18 = vld [vmem:[#allocation5 + $0x310] sm:$0xff] }
  0x20   :  { %v89_v38 = vld [vmem:[#allocation5 + $0x148] sm:$0xff]  ;;  %382 = vmatpush.msra.mxu3 %v225_v35  ;;  %v88_v44 = vld [vmem:[#allocation5 + $0x140] sm:$0xff]  ;;  %336 = vmatpush.msra.mxu1 %v224_v41  ;;  %v274_v19 = vld [vmem:[#allocation5 + $0x710] sm:$0xff] }
  0x21   :  { %v217_v39 = vld [vmem:[#allocation5 + $0x548] sm:$0xff]  ;;  %360 = vmatpush.msra.mxu2 %v89_v38  ;;  %v216_v45 = vld [vmem:[#allocation5 + $0x540] sm:$0xff]  ;;  %314 = vmatpush.msra.mxu0 %v88_v44  ;;  %v123_v20 = vld [vmem:[#allocation5 + $0x258] sm:$0xff] }
  0x22   :  { %v81_v42 = vld [vmem:[#allocation5 + $0x108] sm:$0xff]  ;;  %383 = vmatpush.msra.mxu3 %v217_v39  ;;  %v80_v48 = vld [vmem:[#allocation5 + $0x100] sm:$0xff]  ;;  %337 = vmatpush.msra.mxu1 %v216_v45  ;;  %v251_v21 = vld [vmem:[#allocation5 + $0x658] sm:$0xff] }
  0x23   :  { %v209_v43 = vld [vmem:[#allocation5 + $0x508] sm:$0xff]  ;;  %361 = vmatpush.msra.mxu2 %v81_v42  ;;  %v208_v49 = vld [vmem:[#allocation5 + $0x500] sm:$0xff]  ;;  %315 = vmatpush.msra.mxu0 %v80_v48  ;;  %v138_v22 = vld [vmem:[#allocation5 + $0x2d0] sm:$0xff] }
  0x24   :  { %v73_v46 = vld [vmem:[#allocation5 + $0xc8] sm:$0xff]  ;;  %384 = vmatpush.msra.mxu3 %v209_v43  ;;  %v72_v52 = vld [vmem:[#allocation5 + $0xc0] sm:$0xff]  ;;  %338 = vmatpush.msra.mxu1 %v208_v49  ;;  %v266_v23 = vld [vmem:[#allocation5 + $0x6d0] sm:$0xff] }
  0x25   :  { %v201_v47 = vld [vmem:[#allocation5 + $0x4c8] sm:$0xff]  ;;  %362 = vmatpush.msra.mxu2 %v73_v46  ;;  %v200_v53 = vld [vmem:[#allocation5 + $0x4c0] sm:$0xff]  ;;  %316 = vmatpush.msra.mxu0 %v72_v52  ;;  %v115_v24 = vld [vmem:[#allocation5 + $0x218] sm:$0xff] }
  0x26   :  { %v65_v50 = vld [vmem:[#allocation5 + $0x88] sm:$0xff]  ;;  %385 = vmatpush.msra.mxu3 %v201_v47  ;;  %v64_v56 = vld [vmem:[#allocation5 + $0x80] sm:$0xff]  ;;  %339 = vmatpush.msra.mxu1 %v200_v53  ;;  %v243_v25 = vld [vmem:[#allocation5 + $0x618] sm:$0xff] }
  0x27   :  { %v193_v51 = vld [vmem:[#allocation5 + $0x488] sm:$0xff]  ;;  %363 = vmatpush.msra.mxu2 %v65_v50  ;;  %v192_v57 = vld [vmem:[#allocation5 + $0x480] sm:$0xff]  ;;  %317 = vmatpush.msra.mxu0 %v64_v56  ;;  %v130_v26 = vld [vmem:[#allocation5 + $0x290] sm:$0xff] }
  0x28   :  { %v57_v54 = vld [vmem:[#allocation5 + $0x48] sm:$0xff]  ;;  %386 = vmatpush.msra.mxu3 %v193_v51  ;;  %340 = vmatpush.msra.mxu1 %v192_v57  ;;  %v56_v62 = vld [vmem:[#allocation5 + $0x40] sm:$0xff]  ;;  %v258_v27 = vld [vmem:[#allocation5 + $0x690] sm:$0xff] }
  0x29   :  { %v185_v55 = vld [vmem:[#allocation5 + $0x448] sm:$0xff]  ;;  %364 = vmatpush.msra.mxu2 %v57_v54  ;;  %v184_v63 = vld [vmem:[#allocation5 + $0x440] sm:$0xff]  ;;  %318 = vmatpush.msra.mxu0 %v56_v62  ;;  %v107_v28 = vld [vmem:[#allocation5 + $0x1d8] sm:$0xff] }
  0x2a   :  { %v49_v58 = vld [vmem:[#allocation5 + $0x8] sm:$0xff]  ;;  %387 = vmatpush.msra.mxu3 %v185_v55  ;;  %v48_v2 = vld [vmem:[#allocation5] sm:$0xff]  ;;  %341 = vmatpush.msra.mxu1 %v184_v63  ;;  %v235_v29 = vld [vmem:[#allocation5 + $0x5d8] sm:$0xff] }
  0x2b   :  { %v177_v59 = vld [vmem:[#allocation5 + $0x408] sm:$0xff]  ;;  %365 = vmatpush.msra.mxu2 %v49_v58  ;;  %v176_v3 = vld [vmem:[#allocation5 + $0x400] sm:$0xff]  ;;  %319 = vmatpush.msra.mxu0 %v48_v2  ;;  %v122_v30 = vld [vmem:[#allocation5 + $0x250] sm:$0xff] }
  0x2c   :  { %388 = vmatpush.msra.mxu3 %v177_v59  ;;  %342 = vmatpush.msra.mxu1 %v176_v3  ;;  %v250_v31 = vld [vmem:[#allocation5 + $0x650] sm:$0xff]  ;;  %v99_v32 = vld [vmem:[#allocation5 + $0x198] sm:$0xff]  ;;  %v824_v58 = vld [vmem:[#allocation2] sm:$0xff] }
  0x2d   :  { %442 = vmatpush.msrb.mxu2 %v171_v60  ;;  %396 = vmatpush.msrb.mxu0 %v170_v6  ;;  %v227_v33 = vld [vmem:[#allocation5 + $0x598] sm:$0xff]  ;;  %v114_v34 = vld [vmem:[#allocation5 + $0x210] sm:$0xff]  ;;  %v826_v59 = vld [vmem:[#allocation2 + $0x8] sm:$0xff] }
  0x2e   :  { %465 = vmatpush.msrb.mxu3 %v299_v61  ;;  %419 = vmatpush.msrb.mxu1 %v298_v7  ;;  %v242_v35 = vld [vmem:[#allocation5 + $0x610] sm:$0xff]  ;;  %v91_v36 = vld [vmem:[#allocation5 + $0x158] sm:$0xff]  ;;  %v173_v60 = vld [vmem:[#allocation5 + $0x3e8] sm:$0xff] }
  0x2f   :  { %443 = vmatpush.msrb.mxu2 %v163_v0  ;;  %397 = vmatpush.msrb.mxu0 %v162_v10  ;;  %v219_v37 = vld [vmem:[#allocation5 + $0x558] sm:$0xff]  ;;  %v106_v38 = vld [vmem:[#allocation5 + $0x1d0] sm:$0xff]  ;;  %v301_v61 = vld [vmem:[#allocation5 + $0x7e8] sm:$0xff] }
  0x30   :  { %466 = vmatpush.msrb.mxu3 %v291_v1  ;;  %420 = vmatpush.msrb.mxu1 %v290_v11  ;;  %v234_v39 = vld [vmem:[#allocation5 + $0x5d0] sm:$0xff]  ;;  %v83_v40 = vld [vmem:[#allocation5 + $0x118] sm:$0xff]  ;;  %v165_v0 = vld [vmem:[#allocation5 + $0x3a8] sm:$0xff] }
  0x31   :  { %444 = vmatpush.msrb.mxu2 %v155_v4  ;;  %398 = vmatpush.msrb.mxu0 %v154_v14  ;;  %v211_v41 = vld [vmem:[#allocation5 + $0x518] sm:$0xff]  ;;  %v98_v42 = vld [vmem:[#allocation5 + $0x190] sm:$0xff]  ;;  %v293_v1 = vld [vmem:[#allocation5 + $0x7a8] sm:$0xff] }
  0x32   :  { %467 = vmatpush.msrb.mxu3 %v283_v5  ;;  %421 = vmatpush.msrb.mxu1 %v282_v15  ;;  %v226_v43 = vld [vmem:[#allocation5 + $0x590] sm:$0xff]  ;;  %v75_v44 = vld [vmem:[#allocation5 + $0xd8] sm:$0xff]  ;;  %v157_v4 = vld [vmem:[#allocation5 + $0x368] sm:$0xff] }
  0x33   :  { %445 = vmatpush.msrb.mxu2 %v147_v8  ;;  %399 = vmatpush.msrb.mxu0 %v146_v18  ;;  %v203_v45 = vld [vmem:[#allocation5 + $0x4d8] sm:$0xff]  ;;  %v90_v46 = vld [vmem:[#allocation5 + $0x150] sm:$0xff]  ;;  %v285_v5 = vld [vmem:[#allocation5 + $0x768] sm:$0xff] }
  0x34   :  { %468 = vmatpush.msrb.mxu3 %v275_v9  ;;  %422 = vmatpush.msrb.mxu1 %v274_v19  ;;  %v218_v47 = vld [vmem:[#allocation5 + $0x550] sm:$0xff]  ;;  %v67_v48 = vld [vmem:[#allocation5 + $0x98] sm:$0xff]  ;;  %v172_v8 = vld [vmem:[#allocation5 + $0x3e0] sm:$0xff] }
  0x35   :  { %446 = vmatpush.msrb.mxu2 %v139_v12  ;;  %400 = vmatpush.msrb.mxu0 %v138_v22  ;;  %v195_v49 = vld [vmem:[#allocation5 + $0x498] sm:$0xff]  ;;  %v82_v50 = vld [vmem:[#allocation5 + $0x110] sm:$0xff]  ;;  %v300_v9 = vld [vmem:[#allocation5 + $0x7e0] sm:$0xff] }
  0x36   :  { %469 = vmatpush.msrb.mxu3 %v267_v13  ;;  %423 = vmatpush.msrb.mxu1 %v266_v23  ;;  %v210_v51 = vld [vmem:[#allocation5 + $0x510] sm:$0xff]  ;;  %v59_v52 = vld [vmem:[#allocation5 + $0x58] sm:$0xff]  ;;  %v149_v10 = vld [vmem:[#allocation5 + $0x328] sm:$0xff] }
  0x37   :  { %447 = vmatpush.msrb.mxu2 %v131_v16  ;;  %401 = vmatpush.msrb.mxu0 %v130_v26  ;;  %v187_v53 = vld [vmem:[#allocation5 + $0x458] sm:$0xff]  ;;  %v74_v54 = vld [vmem:[#allocation5 + $0xd0] sm:$0xff]  ;;  %v277_v11 = vld [vmem:[#allocation5 + $0x728] sm:$0xff] }
  0x38   :  { %470 = vmatpush.msrb.mxu3 %v259_v17  ;;  %424 = vmatpush.msrb.mxu1 %v258_v27  ;;  %v202_v55 = vld [vmem:[#allocation5 + $0x4d0] sm:$0xff]  ;;  %v51_v56 = vld [vmem:[#allocation5 + $0x18] sm:$0xff]  ;;  %v164_v12 = vld [vmem:[#allocation5 + $0x3a0] sm:$0xff] }
  0x39   :  { %448 = vmatpush.msrb.mxu2 %v123_v20  ;;  %402 = vmatpush.msrb.mxu0 %v122_v30  ;;  %v179_v57 = vld [vmem:[#allocation5 + $0x418] sm:$0xff]  ;;  %v66_v62 = vld [vmem:[#allocation5 + $0x90] sm:$0xff]  ;;  %v292_v13 = vld [vmem:[#allocation5 + $0x7a0] sm:$0xff] }
  0x3a   :  { %471 = vmatpush.msrb.mxu3 %v251_v21  ;;  %425 = vmatpush.msrb.mxu1 %v250_v31  ;;  %v194_v63 = vld [vmem:[#allocation5 + $0x490] sm:$0xff]  ;;  %v141_v14 = vld [vmem:[#allocation5 + $0x2e8] sm:$0xff]  ;;  %v156_v16 = vld [vmem:[#allocation5 + $0x360] sm:$0xff] }
  0x3b   :  { %449 = vmatpush.msrb.mxu2 %v115_v24  ;;  %403 = vmatpush.msrb.mxu0 %v114_v34  ;;  %v58_v2 = vld [vmem:[#allocation5 + $0x50] sm:$0xff]  ;;  %v269_v15 = vld [vmem:[#allocation5 + $0x6e8] sm:$0xff]  ;;  %v284_v17 = vld [vmem:[#allocation5 + $0x760] sm:$0xff] }
  0x3c   :  { %472 = vmatpush.msrb.mxu3 %v243_v25  ;;  %426 = vmatpush.msrb.mxu1 %v242_v35  ;;  %v186_v3 = vld [vmem:[#allocation5 + $0x450] sm:$0xff]  ;;  %v133_v18 = vld [vmem:[#allocation5 + $0x2a8] sm:$0xff]  ;;  %v148_v20 = vld [vmem:[#allocation5 + $0x320] sm:$0xff] }
  0x3d   :  { %450 = vmatpush.msrb.mxu2 %v107_v28  ;;  %404 = vmatpush.msrb.mxu0 %v106_v38  ;;  %v50_v6 = vld [vmem:[#allocation5 + $0x10] sm:$0xff]  ;;  %v261_v19 = vld [vmem:[#allocation5 + $0x6a8] sm:$0xff]  ;;  %v276_v21 = vld [vmem:[#allocation5 + $0x720] sm:$0xff] }
  0x3e   :  { %473 = vmatpush.msrb.mxu3 %v235_v29  ;;  %427 = vmatpush.msrb.mxu1 %v234_v39  ;;  %v178_v7 = vld [vmem:[#allocation5 + $0x410] sm:$0xff]  ;;  %v125_v22 = vld [vmem:[#allocation5 + $0x268] sm:$0xff]  ;;  %v140_v24 = vld [vmem:[#allocation5 + $0x2e0] sm:$0xff] }
  0x3f   :  { %451 = vmatpush.msrb.mxu2 %v99_v32  ;;  %405 = vmatpush.msrb.mxu0 %v98_v42  ;;  %v253_v23 = vld [vmem:[#allocation5 + $0x668] sm:$0xff]  ;;  %v268_v25 = vld [vmem:[#allocation5 + $0x6e0] sm:$0xff] }
  0x40   :  { %474 = vmatpush.msrb.mxu3 %v227_v33  ;;  %428 = vmatpush.msrb.mxu1 %v226_v43  ;;  %v117_v26 = vld [vmem:[#allocation5 + $0x228] sm:$0xff]  ;;  %v132_v28 = vld [vmem:[#allocation5 + $0x2a0] sm:$0xff] }
  0x41   :  { %452 = vmatpush.msrb.mxu2 %v91_v36  ;;  %406 = vmatpush.msrb.mxu0 %v90_v46  ;;  %v245_v27 = vld [vmem:[#allocation5 + $0x628] sm:$0xff]  ;;  %v260_v29 = vld [vmem:[#allocation5 + $0x6a0] sm:$0xff] }
  0x42   :  { %475 = vmatpush.msrb.mxu3 %v219_v37  ;;  %429 = vmatpush.msrb.mxu1 %v218_v47  ;;  %v109_v30 = vld [vmem:[#allocation5 + $0x1e8] sm:$0xff]  ;;  %v124_v32 = vld [vmem:[#allocation5 + $0x260] sm:$0xff] }
  0x43   :  { %453 = vmatpush.msrb.mxu2 %v83_v40  ;;  %407 = vmatpush.msrb.mxu0 %v82_v50  ;;  %v237_v31 = vld [vmem:[#allocation5 + $0x5e8] sm:$0xff]  ;;  %v252_v33 = vld [vmem:[#allocation5 + $0x660] sm:$0xff]  ;;  %v832_v40 = vld [vmem:[#allocation2 + $0x10] sm:$0xff] }
  0x44   :  { %476 = vmatpush.msrb.mxu3 %v211_v41  ;;  %430 = vmatpush.msrb.mxu1 %v210_v51  ;;  %v101_v34 = vld [vmem:[#allocation5 + $0x1a8] sm:$0xff]  ;;  %v116_v36 = vld [vmem:[#allocation5 + $0x220] sm:$0xff]  ;;  %v834_v41 = vld [vmem:[#allocation2 + $0x18] sm:$0xff] }
  0x45   :  { %454 = vmatpush.msrb.mxu2 %v75_v44  ;;  %408 = vmatpush.msrb.mxu0 %v74_v54  ;;  %v229_v35 = vld [vmem:[#allocation5 + $0x5a8] sm:$0xff]  ;;  %v244_v37 = vld [vmem:[#allocation5 + $0x620] sm:$0xff] }
  0x46   :  { %477 = vmatpush.msrb.mxu3 %v203_v45  ;;  %431 = vmatpush.msrb.mxu1 %v202_v55  ;;  %v93_v38 = vld [vmem:[#allocation5 + $0x168] sm:$0xff]  ;;  %v108_v42 = vld [vmem:[#allocation5 + $0x1e0] sm:$0xff] }
  0x47   :  { %455 = vmatpush.msrb.mxu2 %v67_v48  ;;  %389 = vmatmul.f32.vlgmr.msra.gmra.mxu3 %v826_v59  ;;  %v221_v39 = vld [vmem:[#allocation5 + $0x568] sm:$0xff]  ;;  %v236_v43 = vld [vmem:[#allocation5 + $0x5e0] sm:$0xff] }
  0x48   :  { %478 = vmatpush.msrb.mxu3 %v195_v49  ;;  %366 = vmatmul.f32.vlgmr.msra.gmra.mxu2 %v824_v58  ;;  %v85_v44 = vld [vmem:[#allocation5 + $0x128] sm:$0xff]  ;;  %v100_v46 = vld [vmem:[#allocation5 + $0x1a0] sm:$0xff] }
  0x49   :  { %456 = vmatpush.msrb.mxu2 %v59_v52  ;;  %409 = vmatpush.msrb.mxu0 %v66_v62  ;;  %v213_v45 = vld [vmem:[#allocation5 + $0x528] sm:$0xff]  ;;  %v228_v47 = vld [vmem:[#allocation5 + $0x5a0] sm:$0xff] }
  0x4a   :  { %479 = vmatpush.msrb.mxu3 %v187_v53  ;;  %432 = vmatpush.msrb.mxu1 %v194_v63  ;;  %v77_v48 = vld [vmem:[#allocation5 + $0xe8] sm:$0xff]  ;;  %v92_v50 = vld [vmem:[#allocation5 + $0x160] sm:$0xff] }
  0x4b   :  { %457 = vmatpush.msrb.mxu2 %v51_v56  ;;  %410 = vmatpush.msrb.mxu0 %v58_v2  ;;  %v205_v49 = vld [vmem:[#allocation5 + $0x4e8] sm:$0xff]  ;;  %v220_v51 = vld [vmem:[#allocation5 + $0x560] sm:$0xff] }
  0x4c   :  { %480 = vmatpush.msrb.mxu3 %v179_v57  ;;  %433 = vmatpush.msrb.mxu1 %v186_v3  ;;  %v69_v52 = vld [vmem:[#allocation5 + $0xa8] sm:$0xff]  ;;  %v84_v54 = vld [vmem:[#allocation5 + $0x120] sm:$0xff] }
  0x4d   :  { %534 = vmatpush.msra.mxu2 %v173_v60  ;;  %411 = vmatpush.msrb.mxu0 %v50_v6  ;;  %v197_v53 = vld [vmem:[#allocation5 + $0x4a8] sm:$0xff]  ;;  %v212_v55 = vld [vmem:[#allocation5 + $0x520] sm:$0xff] }
  0x4e   :  { %557 = vmatpush.msra.mxu3 %v301_v61  ;;  %434 = vmatpush.msrb.mxu1 %v178_v7  ;;  %v61_v56 = vld [vmem:[#allocation5 + $0x68] sm:$0xff]  ;;  %v76_v60 = vld [vmem:[#allocation5 + $0xe0] sm:$0xff] }
  0x4f   :  { %535 = vmatpush.msra.mxu2 %v165_v0  ;;  %320 = vmatmul.f32.vlgmr.msra.gmra.mxu0 %v824_v58  ;;  %v189_v57 = vld [vmem:[#allocation5 + $0x468] sm:$0xff]  ;;  %v204_v61 = vld [vmem:[#allocation5 + $0x4e0] sm:$0xff]  ;;  %v175_v0 = vld [vmem:[#allocation5 + $0x3f8] sm:$0xff] }
  0x50   :  { %558 = vmatpush.msra.mxu3 %v293_v1  ;;  %343 = vmatmul.f32.vlgmr.msra.gmra.mxu1 %v826_v59  ;;  %v53_v62 = vld [vmem:[#allocation5 + $0x28] sm:$0xff]  ;;  %v303_v1 = vld [vmem:[#allocation5 + $0x7f8] sm:$0xff]  ;;  %v68_v2 = vld [vmem:[#allocation5 + $0xa0] sm:$0xff] }
  0x51   :  { %536 = vmatpush.msra.mxu2 %v157_v4  ;;  %488 = vmatpush.msra.mxu0 %v172_v8  ;;  %v181_v63 = vld [vmem:[#allocation5 + $0x428] sm:$0xff]  ;;  %v196_v3 = vld [vmem:[#allocation5 + $0x4a0] sm:$0xff]  ;;  %v167_v4 = vld [vmem:[#allocation5 + $0x3b8] sm:$0xff] }
  0x52   :  { %559 = vmatpush.msra.mxu3 %v285_v5  ;;  %511 = vmatpush.msra.mxu1 %v300_v9  ;;  %v295_v5 = vld [vmem:[#allocation5 + $0x7b8] sm:$0xff]  ;;  %v60_v6 = vld [vmem:[#allocation5 + $0x60] sm:$0xff] }
  0x53   :  { %537 = vmatpush.msra.mxu2 %v149_v10  ;;  %489 = vmatpush.msra.mxu0 %v164_v12  ;;  %v188_v7 = vld [vmem:[#allocation5 + $0x460] sm:$0xff]  ;;  %v159_v8 = vld [vmem:[#allocation5 + $0x378] sm:$0xff]  ;;  %v174_v12 = vld [vmem:[#allocation5 + $0x3f0] sm:$0xff] }
  0x54   :  { %560 = vmatpush.msra.mxu3 %v277_v11  ;;  %512 = vmatpush.msra.mxu1 %v292_v13  ;;  %v287_v9 = vld [vmem:[#allocation5 + $0x778] sm:$0xff]  ;;  %v52_v10 = vld [vmem:[#allocation5 + $0x20] sm:$0xff]  ;;  %v302_v13 = vld [vmem:[#allocation5 + $0x7f0] sm:$0xff] }
  0x55   :  { %538 = vmatpush.msra.mxu2 %v141_v14  ;;  %490 = vmatpush.msra.mxu0 %v156_v16  ;;  %v180_v11 = vld [vmem:[#allocation5 + $0x420] sm:$0xff]  ;;  %v151_v14 = vld [vmem:[#allocation5 + $0x338] sm:$0xff]  ;;  %v166_v16 = vld [vmem:[#allocation5 + $0x3b0] sm:$0xff] }
  0x56   :  { %561 = vmatpush.msra.mxu3 %v269_v15  ;;  %513 = vmatpush.msra.mxu1 %v284_v17  ;;  %v279_v15 = vld [vmem:[#allocation5 + $0x738] sm:$0xff]  ;;  %v294_v17 = vld [vmem:[#allocation5 + $0x7b0] sm:$0xff] }
  0x57   :  { %539 = vmatpush.msra.mxu2 %v133_v18  ;;  %491 = vmatpush.msra.mxu0 %v148_v20  ;;  %v143_v18 = vld [vmem:[#allocation5 + $0x2f8] sm:$0xff]  ;;  %v158_v20 = vld [vmem:[#allocation5 + $0x370] sm:$0xff] }
  0x58   :  { %562 = vmatpush.msra.mxu3 %v261_v19  ;;  %514 = vmatpush.msra.mxu1 %v276_v21  ;;  %v271_v19 = vld [vmem:[#allocation5 + $0x6f8] sm:$0xff]  ;;  %v286_v21 = vld [vmem:[#allocation5 + $0x770] sm:$0xff] }
  0x59   :  { %540 = vmatpush.msra.mxu2 %v125_v22  ;;  %492 = vmatpush.msra.mxu0 %v140_v24  ;;  %v135_v22 = vld [vmem:[#allocation5 + $0x2b8] sm:$0xff]  ;;  %v150_v24 = vld [vmem:[#allocation5 + $0x330] sm:$0xff] }
  0x5a   :  { %563 = vmatpush.msra.mxu3 %v253_v23  ;;  %515 = vmatpush.msra.mxu1 %v268_v25  ;;  %v263_v23 = vld [vmem:[#allocation5 + $0x6b8] sm:$0xff]  ;;  %v278_v25 = vld [vmem:[#allocation5 + $0x730] sm:$0xff] }
  0x5b   :  { %541 = vmatpush.msra.mxu2 %v117_v26  ;;  %493 = vmatpush.msra.mxu0 %v132_v28  ;;  %v127_v26 = vld [vmem:[#allocation5 + $0x278] sm:$0xff]  ;;  %v142_v28 = vld [vmem:[#allocation5 + $0x2f0] sm:$0xff] }
  0x5c   :  { %564 = vmatpush.msra.mxu3 %v245_v27  ;;  %516 = vmatpush.msra.mxu1 %v260_v29  ;;  %v255_v27 = vld [vmem:[#allocation5 + $0x678] sm:$0xff]  ;;  %v270_v29 = vld [vmem:[#allocation5 + $0x6f0] sm:$0xff] }
  0x5d   :  { %542 = vmatpush.msra.mxu2 %v109_v30  ;;  %494 = vmatpush.msra.mxu0 %v124_v32  ;;  %v119_v30 = vld [vmem:[#allocation5 + $0x238] sm:$0xff]  ;;  %v134_v32 = vld [vmem:[#allocation5 + $0x2b0] sm:$0xff] }
  0x5e   :  { %565 = vmatpush.msra.mxu3 %v237_v31  ;;  %517 = vmatpush.msra.mxu1 %v252_v33  ;;  %v247_v31 = vld [vmem:[#allocation5 + $0x638] sm:$0xff]  ;;  %v262_v33 = vld [vmem:[#allocation5 + $0x6b0] sm:$0xff] }
  0x5f   :  { %543 = vmatpush.msra.mxu2 %v101_v34  ;;  %495 = vmatpush.msra.mxu0 %v116_v36  ;;  %v111_v34 = vld [vmem:[#allocation5 + $0x1f8] sm:$0xff]  ;;  %v126_v36 = vld [vmem:[#allocation5 + $0x270] sm:$0xff] }
  0x60   :  { %566 = vmatpush.msra.mxu3 %v229_v35  ;;  %518 = vmatpush.msra.mxu1 %v244_v37  ;;  %v239_v35 = vld [vmem:[#allocation5 + $0x5f8] sm:$0xff]  ;;  %v254_v37 = vld [vmem:[#allocation5 + $0x670] sm:$0xff] }
  0x61   :  { %544 = vmatpush.msra.mxu2 %v93_v38  ;;  %392 = vmatmul.f32.gmra.mxu3 %v834_v41  ;;  %v103_v38 = vld [vmem:[#allocation5 + $0x1b8] sm:$0xff] }
  0x62   :  { %567 = vmatpush.msra.mxu3 %v221_v39  ;;  %369 = vmatmul.f32.gmra.mxu2 %v832_v40  ;;  %v231_v39 = vld [vmem:[#allocation5 + $0x5b8] sm:$0xff] }
  0x63   :  { %496 = vmatpush.msra.mxu0 %v108_v42  ;;  %519 = vmatpush.msra.mxu1 %v236_v43  ;;  %v118_v42 = vld [vmem:[#allocation5 + $0x230] sm:$0xff] }
  0x64   :  { %545 = vmatpush.msra.mxu2 %v85_v44  ;;  %568 = vmatpush.msra.mxu3 %v213_v45  ;;  %v246_v43 = vld [vmem:[#allocation5 + $0x630] sm:$0xff]  ;;  %v95_v44 = vld [vmem:[#allocation5 + $0x178] sm:$0xff] }
  0x65   :  { %497 = vmatpush.msra.mxu0 %v100_v46  ;;  %520 = vmatpush.msra.mxu1 %v228_v47  ;;  %v223_v45 = vld [vmem:[#allocation5 + $0x578] sm:$0xff]  ;;  %v110_v46 = vld [vmem:[#allocation5 + $0x1f0] sm:$0xff] }
  0x66   :  { %546 = vmatpush.msra.mxu2 %v77_v48  ;;  %569 = vmatpush.msra.mxu3 %v205_v49  ;;  %v238_v47 = vld [vmem:[#allocation5 + $0x5f0] sm:$0xff]  ;;  %v87_v48 = vld [vmem:[#allocation5 + $0x138] sm:$0xff] }
  0x67   :  { %498 = vmatpush.msra.mxu0 %v92_v50  ;;  %521 = vmatpush.msra.mxu1 %v220_v51  ;;  %v215_v49 = vld [vmem:[#allocation5 + $0x538] sm:$0xff]  ;;  %v102_v50 = vld [vmem:[#allocation5 + $0x1b0] sm:$0xff] }
  0x68   :  { %547 = vmatpush.msra.mxu2 %v69_v52  ;;  %570 = vmatpush.msra.mxu3 %v197_v53  ;;  %v230_v51 = vld [vmem:[#allocation5 + $0x5b0] sm:$0xff]  ;;  %v79_v52 = vld [vmem:[#allocation5 + $0xf8] sm:$0xff] }
  0x69   :  { %323 = vmatmul.f32.gmra.mxu0 %v832_v40  ;;  %346 = vmatmul.f32.gmra.mxu1 %v834_v41  ;;  %v207_v53 = vld [vmem:[#allocation5 + $0x4f8] sm:$0xff] }
  0x6a   :  { %499 = vmatpush.msra.mxu0 %v84_v54  ;;  %522 = vmatpush.msra.mxu1 %v212_v55  ;;  %v94_v54 = vld [vmem:[#allocation5 + $0x170] sm:$0xff] }
  0x6b   :  { %548 = vmatpush.msra.mxu2 %v61_v56  ;;  %571 = vmatpush.msra.mxu3 %v189_v57  ;;  %v222_v55 = vld [vmem:[#allocation5 + $0x570] sm:$0xff]  ;;  %v71_v56 = vld [vmem:[#allocation5 + $0xb8] sm:$0xff] }
  0x6c   :  { %458 = vmatmul.f32.vlgmr.msrb.gmra.mxu2 %v824_v58  ;;  %481 = vmatmul.f32.vlgmr.msrb.gmra.mxu3 %v826_v59  ;;  %v199_v57 = vld [vmem:[#allocation5 + $0x4b8] sm:$0xff] }
  0x6d   :  { %500 = vmatpush.msra.mxu0 %v76_v60  ;;  %523 = vmatpush.msra.mxu1 %v204_v61  ;;  %v86_v60 = vld [vmem:[#allocation5 + $0x130] sm:$0xff] }
  0x6e   :  { %549 = vmatpush.msra.mxu2 %v53_v62  ;;  %572 = vmatpush.msra.mxu3 %v181_v63  ;;  %v214_v61 = vld [vmem:[#allocation5 + $0x530] sm:$0xff]  ;;  %v63_v62 = vld [vmem:[#allocation5 + $0x78] sm:$0xff] }
  0x6f   :  { %501 = vmatpush.msra.mxu0 %v68_v2  ;;  %524 = vmatpush.msra.mxu1 %v196_v3  ;;  %v191_v63 = vld [vmem:[#allocation5 + $0x478] sm:$0xff] }
  0x70   :  { %626 = vmatpush.msrb.mxu2 %v175_v0  ;;  %649 = vmatpush.msrb.mxu3 %v303_v1  ;;  %v78_v0 = vld [vmem:[#allocation5 + $0xf0] sm:$0xff]  ;;  %v55_v2 = vld [vmem:[#allocation5 + $0x38] sm:$0xff] }
  0x71   :  { %502 = vmatpush.msra.mxu0 %v60_v6  ;;  %525 = vmatpush.msra.mxu1 %v188_v7  ;;  %v206_v1 = vld [vmem:[#allocation5 + $0x4f0] sm:$0xff]  ;;  %v183_v3 = vld [vmem:[#allocation5 + $0x438] sm:$0xff] }
  0x72   :  { %627 = vmatpush.msrb.mxu2 %v167_v4  ;;  %650 = vmatpush.msrb.mxu3 %v295_v5  ;;  %v70_v4 = vld [vmem:[#allocation5 + $0xb0] sm:$0xff] }
  0x73   :  { %412 = vmatmul.f32.vlgmr.msrb.gmra.mxu0 %v824_v58  ;;  %435 = vmatmul.f32.vlgmr.msrb.gmra.mxu1 %v826_v59  ;;  %v198_v5 = vld [vmem:[#allocation5 + $0x4b0] sm:$0xff] }
  0x74   :  { %628 = vmatpush.msrb.mxu2 %v159_v8  ;;  %651 = vmatpush.msrb.mxu3 %v287_v9  ;;  %v62_v6 = vld [vmem:[#allocation5 + $0x70] sm:$0xff] }
  0x75   :  { %503 = vmatpush.msra.mxu0 %v52_v10  ;;  %526 = vmatpush.msra.mxu1 %v180_v11  ;;  %v190_v7 = vld [vmem:[#allocation5 + $0x470] sm:$0xff] }
  0x76   :  { %629 = vmatpush.msrb.mxu2 %v151_v14  ;;  %652 = vmatpush.msrb.mxu3 %v279_v15  ;;  %v54_v8 = vld [vmem:[#allocation5 + $0x30] sm:$0xff] }
  0x77   :  { %580 = vmatpush.msrb.mxu0 %v174_v12  ;;  %603 = vmatpush.msrb.mxu1 %v302_v13  ;;  %v182_v9 = vld [vmem:[#allocation5 + $0x430] sm:$0xff] }
  0x78   :  { %461 = vmatmul.f32.gmra.mxu2 %v832_v40  ;;  %484 = vmatmul.f32.gmra.mxu3 %v834_v41 }
  0x79   :  { %581 = vmatpush.msrb.mxu0 %v166_v16  ;;  %604 = vmatpush.msrb.mxu1 %v294_v17 }
  0x7a   :  { %630 = vmatpush.msrb.mxu2 %v143_v18  ;;  %653 = vmatpush.msrb.mxu3 %v271_v19 }
  0x7b   :  { %582 = vmatpush.msrb.mxu0 %v158_v20  ;;  %605 = vmatpush.msrb.mxu1 %v286_v21 }
  0x7c   :  { %631 = vmatpush.msrb.mxu2 %v135_v22  ;;  %654 = vmatpush.msrb.mxu3 %v263_v23 }
  0x7d   :  { %583 = vmatpush.msrb.mxu0 %v150_v24  ;;  %606 = vmatpush.msrb.mxu1 %v278_v25 }
  0x7e   :  { %632 = vmatpush.msrb.mxu2 %v127_v26  ;;  %655 = vmatpush.msrb.mxu3 %v255_v27 }
  0x7f   :  { %415 = vmatmul.f32.gmra.mxu0 %v832_v40  ;;  %438 = vmatmul.f32.gmra.mxu1 %v834_v41 }
  0x80   :  { %584 = vmatpush.msrb.mxu0 %v142_v28  ;;  %607 = vmatpush.msrb.mxu1 %v270_v29 }
  0x81   :  { %633 = vmatpush.msrb.mxu2 %v119_v30  ;;  %656 = vmatpush.msrb.mxu3 %v247_v31 }
  0x82   :  { %550 = vmatmul.f32.vlgmr.msra.gmra.mxu2 %v824_v58  ;;  %573 = vmatmul.f32.vlgmr.msra.gmra.mxu3 %v826_v59 }
  0x83   :  { %585 = vmatpush.msrb.mxu0 %v134_v32  ;;  %608 = vmatpush.msrb.mxu1 %v262_v33 }
  0x84   :  { %634 = vmatpush.msrb.mxu2 %v111_v34  ;;  %657 = vmatpush.msrb.mxu3 %v239_v35 }
  0x85   :  { %586 = vmatpush.msrb.mxu0 %v126_v36  ;;  %609 = vmatpush.msrb.mxu1 %v254_v37 }
  0x86   :  { %635 = vmatpush.msrb.mxu2 %v103_v38  ;;  %658 = vmatpush.msrb.mxu3 %v231_v39 }
  0x87   :  { %587 = vmatpush.msrb.mxu0 %v118_v42  ;;  %610 = vmatpush.msrb.mxu1 %v246_v43 }
  0x88   :  { %636 = vmatpush.msrb.mxu2 %v95_v44  ;;  %659 = vmatpush.msrb.mxu3 %v223_v45 }
  0x89   :  { %504 = vmatmul.f32.vlgmr.msra.gmra.mxu0 %v824_v58  ;;  %527 = vmatmul.f32.vlgmr.msra.gmra.mxu1 %v826_v59 }
  0x8a   :  { %588 = vmatpush.msrb.mxu0 %v110_v46  ;;  %611 = vmatpush.msrb.mxu1 %v238_v47 }
  0x8b   :  { %637 = vmatpush.msrb.mxu2 %v87_v48  ;;  %660 = vmatpush.msrb.mxu3 %v215_v49 }
  0x8c   :  { %553 = vmatmul.f32.gmra.mxu2 %v832_v40  ;;  %576 = vmatmul.f32.gmra.mxu3 %v834_v41 }
  0x8d   :  { %589 = vmatpush.msrb.mxu0 %v102_v50  ;;  %612 = vmatpush.msrb.mxu1 %v230_v51 }
  0x8e   :  { %638 = vmatpush.msrb.mxu2 %v79_v52  ;;  %661 = vmatpush.msrb.mxu3 %v207_v53 }
  0x8f   :  { %590 = vmatpush.msrb.mxu0 %v94_v54  ;;  %613 = vmatpush.msrb.mxu1 %v222_v55 }
  0x90   :  { %639 = vmatpush.msrb.mxu2 %v71_v56  ;;  %662 = vmatpush.msrb.mxu3 %v199_v57 }
  0x91   :  { %591 = vmatpush.msrb.mxu0 %v86_v60  ;;  %614 = vmatpush.msrb.mxu1 %v214_v61 }
  0x92   :  { %640 = vmatpush.msrb.mxu2 %v63_v62  ;;  %663 = vmatpush.msrb.mxu3 %v191_v63 }
  0x93   :  { %507 = vmatmul.f32.gmra.mxu0 %v832_v40  ;;  %530 = vmatmul.f32.gmra.mxu1 %v834_v41 }
  0x94   :  { %592 = vmatpush.msrb.mxu0 %v78_v0  ;;  %615 = vmatpush.msrb.mxu1 %v206_v1 }
  0x95   :  { %641 = vmatpush.msrb.mxu2 %v55_v2  ;;  %664 = vmatpush.msrb.mxu3 %v183_v3 }
  0x96   :  { %642 = vmatmul.f32.vlgmr.msrb.gmra.mxu2 %v824_v58  ;;  %665 = vmatmul.f32.vlgmr.msrb.gmra.mxu3 %v826_v59 }
  0x97   :  { %593 = vmatpush.msrb.mxu0 %v70_v4  ;;  %616 = vmatpush.msrb.mxu1 %v198_v5 }
  0x99   :  { %594 = vmatpush.msrb.mxu0 %v62_v6  ;;  %617 = vmatpush.msrb.mxu1 %v190_v7 }
  0x9b   :  { %595 = vmatpush.msrb.mxu0 %v54_v8  ;;  %618 = vmatpush.msrb.mxu1 %v182_v9 }
  0x9c   :  { %596 = vmatmul.f32.vlgmr.msrb.gmra.mxu0 %v824_v58  ;;  %619 = vmatmul.f32.vlgmr.msrb.gmra.mxu1 %v826_v59 }
  0x9e   :  { %645 = vmatmul.f32.gmra.mxu2 %v832_v40  ;;  %668 = vmatmul.f32.gmra.mxu3 %v834_v41 }
  0xa4   :  { %599 = vmatmul.f32.gmra.mxu0 %v832_v40  ;;  %622 = vmatmul.f32.gmra.mxu1 %v834_v41 }
  0xca   :  { %v390_v11 = vpop.f32.mrf.mxu3 }
  0xcb   :  { %v367_v10 = vpop.f32.mrf.mxu2 }
  0xcc   :  { %v321_v12 = vpop.f32.mrf.mxu0  ;;  %v391_v14 = vadd.f32 %v390_v11, %v367_v10 }
  0xcd   :  { %v344_v13 = vpop.f32.mrf.mxu1 }
  0xce   :  { %v345_v15 = vadd.f32 %v344_v13, %v321_v12  ;;  %673 = vst [vmem:[#allocation7 + $0x8] sm:$0xff] %v391_v14 }
  0xd0   :  { %672 = vst [vmem:[#allocation7] sm:$0xff] %v345_v15 }
  0xe4   :  { %v393_v58 = vpop.f32.mrf.mxu3 }
  0xe5   :  { %v370_v16 = vpop.f32.mrf.mxu2 }
  0xe6   :  { %v324_v17 = vpop.f32.mrf.mxu0  ;;  %v347_v59 = vpop.f32.mrf.mxu1  ;;  %v394_v18 = vadd.f32 %v393_v58, %v370_v16 }
  0xe7   :  { %v348_v19 = vadd.f32 %v347_v59, %v324_v17 }
  0xe8   :  { %681 = vst [vmem:[#allocation7 + $0x48] sm:$0xff] %v394_v18 }
  0xe9   :  { %680 = vst [vmem:[#allocation7 + $0x40] sm:$0xff] %v348_v19 }
  0xef   :  { %v459_v20 = vpop.f32.mrf.mxu2  ;;  %v482_v40 = vpop.f32.mrf.mxu3 }
  0xf0   :  { %v483_v21 = vadd.f32 %v482_v40, %v459_v20  ;;  %v413_v41 = vpop.f32.mrf.mxu0  ;;  %v436_v22 = vpop.f32.mrf.mxu1 }
  0xf1   :  { %v437_v23 = vadd.f32 %v436_v22, %v413_v41 }
  0xf2   :  { %675 = vst [vmem:[#allocation7 + $0x18] sm:$0xff] %v483_v21 }
  0xf3   :  { %674 = vst [vmem:[#allocation7 + $0x10] sm:$0xff] %v437_v23 }
  0xfb   :  { %v462_v24 = vpop.f32.mrf.mxu2  ;;  %v485_v25 = vpop.f32.mrf.mxu3 }
  0xfc   :  { %v416_v26 = vpop.f32.mrf.mxu0  ;;  %v439_v27 = vpop.f32.mrf.mxu1  ;;  %v486_v28 = vadd.f32 %v485_v25, %v462_v24 }
  0xfd   :  { %v440_v29 = vadd.f32 %v439_v27, %v416_v26 }
  0xfe   :  { %683 = vst [vmem:[#allocation7 + $0x58] sm:$0xff] %v486_v28 }
  0xff   :  { %682 = vst [vmem:[#allocation7 + $0x50] sm:$0xff] %v440_v29 }
 0x105   :  { %v551_v30 = vpop.f32.mrf.mxu2  ;;  %v574_v31 = vpop.f32.mrf.mxu3 }
 0x106   :  { %v505_v32 = vpop.f32.mrf.mxu0  ;;  %v528_v33 = vpop.f32.mrf.mxu1  ;;  %v575_v34 = vadd.f32 %v574_v31, %v551_v30 }
 0x107   :  { %v529_v35 = vadd.f32 %v528_v33, %v505_v32 }
 0x108   :  { %677 = vst [vmem:[#allocation7 + $0x28] sm:$0xff] %v575_v34 }
 0x109   :  { %676 = vst [vmem:[#allocation7 + $0x20] sm:$0xff] %v529_v35 }
 0x10f   :  { %v554_v36 = vpop.f32.mrf.mxu2  ;;  %v577_v37 = vpop.f32.mrf.mxu3 }
 0x110   :  { %v508_v38 = vpop.f32.mrf.mxu0  ;;  %v531_v39 = vpop.f32.mrf.mxu1  ;;  %v578_v42 = vadd.f32 %v577_v37, %v554_v36 }
 0x111   :  { %v532_v43 = vadd.f32 %v531_v39, %v508_v38 }
 0x112   :  { %685 = vst [vmem:[#allocation7 + $0x68] sm:$0xff] %v578_v42 }
 0x113   :  { %684 = vst [vmem:[#allocation7 + $0x60] sm:$0xff] %v532_v43 }
 0x119   :  { %v597_v44 = vpop.f32.mrf.mxu0  ;;  %v620_v45 = vpop.f32.mrf.mxu1 }
 0x11a   :  { %v621_v46 = vadd.f32 %v620_v45, %v597_v44  ;;  %v643_v47 = vpop.f32.mrf.mxu2  ;;  %v666_v48 = vpop.f32.mrf.mxu3 }
 0x11b   :  { %v667_v49 = vadd.f32 %v666_v48, %v643_v47 }
 0x11c   :  { %678 = vst [vmem:[#allocation7 + $0x30] sm:$0xff] %v621_v46 }
 0x11d   :  { %679 = vst [vmem:[#allocation7 + $0x38] sm:$0xff] %v667_v49 }
 0x121   :  { %v600_v50 = vpop.f32.mrf.mxu0  ;;  %v623_v51 = vpop.f32.mrf.mxu1 }
 0x122   :  { %v624_v52 = vadd.f32 %v623_v51, %v600_v50  ;;  %v646_v53 = vpop.f32.mrf.mxu2  ;;  %v669_v54 = vpop.f32.mrf.mxu3 }
 0x123   :  { %v670_v55 = vadd.f32 %v669_v54, %v646_v53 }
 0x124   :  { %686 = vst [vmem:[#allocation7 + $0x70] sm:$0xff] %v624_v52 }
 0x125   :  { %687 = vst [vmem:[#allocation7 + $0x78] sm:$0xff] %v670_v55 }
 0x126   :  { %700 = dma.vmem_to_hbm [thread:$0]  %s693_s1, 2048, %s695_s25, [#allocation4], %s797_s21, %s797_s21, %s798_s22  }
 0x127   :  { %791 = dma.done.wait [#allocation4], 2048  }
 0x128   :  { %792 = vsyncadd [#allocation4], 4294965248 }
 0x129   :  { %705 = vsyncpa [#allocation3], 1 }
 0x12a   :  { %706 = vsyncpa [#allocation6], 1 }
 0x12b   :  { %707 = vsyncpa [#allocation4], 1 }

// kernel: tpu_custom_call.1
= control target key start
LH: loop header
LB: loop body
LE: loop exit
PB: predicated region body
PF: predicated region fallthrough
CT: control target
= control target key end

     0   :  { %7 = vsyncpa [#allocation3], 0  ;;  %s870_s0 = inlined_call_operand.hbm [shape: f32[16,256], index: 0, kind: input, shape index: {}]   ;;  %s871_s1 = inlined_call_operand.hbm [shape: f32[256,1024], index: 1, kind: input, shape index: {}]   ;;  %s872_s2 = inlined_call_operand.hbm [shape: f32[16,1024], index: 2, kind: output, shape index: {}]  }
   0x1   :  { %8 = vsyncpa [#allocation6], 0 }
   0x2   :  { %9 = vsyncpa [#allocation4], 0  ;;  %s14_s11 = sshll.u32 %s870_s0, 4  ;;  %s793_s12 = smov [#allocation2]   ;;  %s15_s11 = int_to_ptr.hbm [resolvable:$true] %s14_s11 }
   0x3   :  { %s16_s13 = sshll.u32 %s793_s12, 4  ;;  %s27_s16 = sshll.u32 %s871_s1, 4  ;;  %s17_s13 = int_to_ptr.vmem [resolvable:$true] %s16_s13  ;;  %s28_s16 = int_to_ptr.hbm [resolvable:$true] %s27_s16 }
   0x4   :  { %s794_s17 = smov 256   ;;  %s795_s18 = smov 16  }
   0x5   :  { %22 = dma.hbm_to_vmem [thread:$0]  %s15_s11, 512, %s17_s13, [#allocation3], %s794_s17, %s794_s17, %s795_s18  }
   0x6   :  { %s796_s19 = smov [#allocation5]   ;;  %s797_s21 = smov 1024  }
   0x7   :  { %s29_s20 = sshll.u32 %s796_s19, 4  ;;  %s798_s22 = smov 64   ;;  %s30_s20 = int_to_ptr.vmem [resolvable:$true] %s29_s20 }
   0x8   :  { %35 = dma.hbm_to_vmem [thread:$0]  %s28_s16, 32768, %s30_s20, [#allocation6], %s797_s21, %s797_s21, %s798_s22  }
   0x9   :  { %787 = dma.done.wait [#allocation3], 512  }
   0xa   :  { %788 = vsyncadd [#allocation3], 4294966784 }
   0xb   :  { %789 = dma.done.wait [#allocation6], 32768  }
   0xc   :  { %790 = vsyncadd [#allocation6], 4294934528  ;;  %v169_v0 = vld [vmem:[#allocation5 + $0x3c8] sm:$0xff]  ;;  %v168_v6 = vld [vmem:[#allocation5 + $0x3c0] sm:$0xff]  ;;  %s799_s0 = smov [#allocation7]   ;;  %s694_s25 = sshll.u32 %s872_s2, 4  ;;  %s695_s25 = int_to_ptr.hbm [resolvable:$true] %s694_s25 }
   0xd   :  { %v297_v1 = vld [vmem:[#allocation5 + $0x7c8] sm:$0xff]  ;;  %350 = vmatpush.msra.mxu2 %v169_v0  ;;  %v296_v7 = vld [vmem:[#allocation5 + $0x7c0] sm:$0xff]  ;;  %304 = vmatpush.msra.mxu0 %v168_v6  ;;  %v171_v60 = vld [vmem:[#allocation5 + $0x3d8] sm:$0xff]  ;;  %s692_s1 = sshll.u32 %s799_s0, 4  ;;  %s693_s1 = int_to_ptr.vmem [resolvable:$true] %s692_s1 }
   0xe   :  { %v161_v2 = vld [vmem:[#allocation5 + $0x388] sm:$0xff]  ;;  %373 = vmatpush.msra.mxu3 %v297_v1  ;;  %v160_v8 = vld [vmem:[#allocation5 + $0x380] sm:$0xff]  ;;  %327 = vmatpush.msra.mxu1 %v296_v7  ;;  %v299_v61 = vld [vmem:[#allocation5 + $0x7d8] sm:$0xff] }
   0xf   :  { %v289_v3 = vld [vmem:[#allocation5 + $0x788] sm:$0xff]  ;;  %351 = vmatpush.msra.mxu2 %v161_v2  ;;  %v288_v9 = vld [vmem:[#allocation5 + $0x780] sm:$0xff]  ;;  %305 = vmatpush.msra.mxu0 %v160_v8  ;;  %v163_v0 = vld [vmem:[#allocation5 + $0x398] sm:$0xff] }
  0x10   :  { %v153_v4 = vld [vmem:[#allocation5 + $0x348] sm:$0xff]  ;;  %374 = vmatpush.msra.mxu3 %v289_v3  ;;  %v152_v12 = vld [vmem:[#allocation5 + $0x340] sm:$0xff]  ;;  %328 = vmatpush.msra.mxu1 %v288_v9  ;;  %v291_v1 = vld [vmem:[#allocation5 + $0x798] sm:$0xff] }
  0x11   :  { %v281_v5 = vld [vmem:[#allocation5 + $0x748] sm:$0xff]  ;;  %352 = vmatpush.msra.mxu2 %v153_v4  ;;  %v280_v13 = vld [vmem:[#allocation5 + $0x740] sm:$0xff]  ;;  %306 = vmatpush.msra.mxu0 %v152_v12  ;;  %v155_v4 = vld [vmem:[#allocation5 + $0x358] sm:$0xff] }
  0x12   :  { %v145_v10 = vld [vmem:[#allocation5 + $0x308] sm:$0xff]  ;;  %375 = vmatpush.msra.mxu3 %v281_v5  ;;  %v144_v16 = vld [vmem:[#allocation5 + $0x300] sm:$0xff]  ;;  %329 = vmatpush.msra.mxu1 %v280_v13  ;;  %v283_v5 = vld [vmem:[#allocation5 + $0x758] sm:$0xff] }
  0x13   :  { %v273_v11 = vld [vmem:[#allocation5 + $0x708] sm:$0xff]  ;;  %353 = vmatpush.msra.mxu2 %v145_v10  ;;  %v272_v17 = vld [vmem:[#allocation5 + $0x700] sm:$0xff]  ;;  %307 = vmatpush.msra.mxu0 %v144_v16  ;;  %v170_v6 = vld [vmem:[#allocation5 + $0x3d0] sm:$0xff] }
  0x14   :  { %v137_v14 = vld [vmem:[#allocation5 + $0x2c8] sm:$0xff]  ;;  %376 = vmatpush.msra.mxu3 %v273_v11  ;;  %v136_v20 = vld [vmem:[#allocation5 + $0x2c0] sm:$0xff]  ;;  %330 = vmatpush.msra.mxu1 %v272_v17  ;;  %v298_v7 = vld [vmem:[#allocation5 + $0x7d0] sm:$0xff] }
  0x15   :  { %v265_v15 = vld [vmem:[#allocation5 + $0x6c8] sm:$0xff]  ;;  %354 = vmatpush.msra.mxu2 %v137_v14  ;;  %v264_v21 = vld [vmem:[#allocation5 + $0x6c0] sm:$0xff]  ;;  %308 = vmatpush.msra.mxu0 %v136_v20  ;;  %v147_v8 = vld [vmem:[#allocation5 + $0x318] sm:$0xff] }
  0x16   :  { %v129_v18 = vld [vmem:[#allocation5 + $0x288] sm:$0xff]  ;;  %377 = vmatpush.msra.mxu3 %v265_v15  ;;  %v128_v24 = vld [vmem:[#allocation5 + $0x280] sm:$0xff]  ;;  %331 = vmatpush.msra.mxu1 %v264_v21  ;;  %v275_v9 = vld [vmem:[#allocation5 + $0x718] sm:$0xff] }
  0x17   :  { %v257_v19 = vld [vmem:[#allocation5 + $0x688] sm:$0xff]  ;;  %355 = vmatpush.msra.mxu2 %v129_v18  ;;  %v256_v25 = vld [vmem:[#allocation5 + $0x680] sm:$0xff]  ;;  %309 = vmatpush.msra.mxu0 %v128_v24  ;;  %v162_v10 = vld [vmem:[#allocation5 + $0x390] sm:$0xff] }
  0x18   :  { %v121_v22 = vld [vmem:[#allocation5 + $0x248] sm:$0xff]  ;;  %378 = vmatpush.msra.mxu3 %v257_v19  ;;  %v120_v28 = vld [vmem:[#allocation5 + $0x240] sm:$0xff]  ;;  %332 = vmatpush.msra.mxu1 %v256_v25  ;;  %v290_v11 = vld [vmem:[#allocation5 + $0x790] sm:$0xff] }
  0x19   :  { %v249_v23 = vld [vmem:[#allocation5 + $0x648] sm:$0xff]  ;;  %356 = vmatpush.msra.mxu2 %v121_v22  ;;  %v248_v29 = vld [vmem:[#allocation5 + $0x640] sm:$0xff]  ;;  %310 = vmatpush.msra.mxu0 %v120_v28  ;;  %v139_v12 = vld [vmem:[#allocation5 + $0x2d8] sm:$0xff] }
  0x1a   :  { %v113_v26 = vld [vmem:[#allocation5 + $0x208] sm:$0xff]  ;;  %379 = vmatpush.msra.mxu3 %v249_v23  ;;  %v112_v32 = vld [vmem:[#allocation5 + $0x200] sm:$0xff]  ;;  %333 = vmatpush.msra.mxu1 %v248_v29  ;;  %v267_v13 = vld [vmem:[#allocation5 + $0x6d8] sm:$0xff] }
  0x1b   :  { %v241_v27 = vld [vmem:[#allocation5 + $0x608] sm:$0xff]  ;;  %357 = vmatpush.msra.mxu2 %v113_v26  ;;  %v240_v33 = vld [vmem:[#allocation5 + $0x600] sm:$0xff]  ;;  %311 = vmatpush.msra.mxu0 %v112_v32  ;;  %v154_v14 = vld [vmem:[#allocation5 + $0x350] sm:$0xff] }
  0x1c   :  { %v105_v30 = vld [vmem:[#allocation5 + $0x1c8] sm:$0xff]  ;;  %380 = vmatpush.msra.mxu3 %v241_v27  ;;  %v104_v36 = vld [vmem:[#allocation5 + $0x1c0] sm:$0xff]  ;;  %334 = vmatpush.msra.mxu1 %v240_v33  ;;  %v282_v15 = vld [vmem:[#allocation5 + $0x750] sm:$0xff] }
  0x1d   :  { %v233_v31 = vld [vmem:[#allocation5 + $0x5c8] sm:$0xff]  ;;  %358 = vmatpush.msra.mxu2 %v105_v30  ;;  %v232_v37 = vld [vmem:[#allocation5 + $0x5c0] sm:$0xff]  ;;  %312 = vmatpush.msra.mxu0 %v104_v36  ;;  %v131_v16 = vld [vmem:[#allocation5 + $0x298] sm:$0xff] }
  0x1e   :  { %v97_v34 = vld [vmem:[#allocation5 + $0x188] sm:$0xff]  ;;  %381 = vmatpush.msra.mxu3 %v233_v31  ;;  %v96_v40 = vld [vmem:[#allocation5 + $0x180] sm:$0xff]  ;;  %335 = vmatpush.msra.mxu1 %v232_v37  ;;  %v259_v17 = vld [vmem:[#allocation5 + $0x698] sm:$0xff] }
  0x1f   :  { %v225_v35 = vld [vmem:[#allocation5 + $0x588] sm:$0xff]  ;;  %359 = vmatpush.msra.mxu2 %v97_v34  ;;  %v224_v41 = vld [vmem:[#allocation5 + $0x580] sm:$0xff]  ;;  %313 = vmatpush.msra.mxu0 %v96_v40  ;;  %v146_v18 = vld [vmem:[#allocation5 + $0x310] sm:$0xff] }
  0x20   :  { %v89_v38 = vld [vmem:[#allocation5 + $0x148] sm:$0xff]  ;;  %382 = vmatpush.msra.mxu3 %v225_v35  ;;  %v88_v44 = vld [vmem:[#allocation5 + $0x140] sm:$0xff]  ;;  %336 = vmatpush.msra.mxu1 %v224_v41  ;;  %v274_v19 = vld [vmem:[#allocation5 + $0x710] sm:$0xff] }
  0x21   :  { %v217_v39 = vld [vmem:[#allocation5 + $0x548] sm:$0xff]  ;;  %360 = vmatpush.msra.mxu2 %v89_v38  ;;  %v216_v45 = vld [vmem:[#allocation5 + $0x540] sm:$0xff]  ;;  %314 = vmatpush.msra.mxu0 %v88_v44  ;;  %v123_v20 = vld [vmem:[#allocation5 + $0x258] sm:$0xff] }
  0x22   :  { %v81_v42 = vld [vmem:[#allocation5 + $0x108] sm:$0xff]  ;;  %383 = vmatpush.msra.mxu3 %v217_v39  ;;  %v80_v48 = vld [vmem:[#allocation5 + $0x100] sm:$0xff]  ;;  %337 = vmatpush.msra.mxu1 %v216_v45  ;;  %v251_v21 = vld [vmem:[#allocation5 + $0x658] sm:$0xff] }
  0x23   :  { %v209_v43 = vld [vmem:[#allocation5 + $0x508] sm:$0xff]  ;;  %361 = vmatpush.msra.mxu2 %v81_v42  ;;  %v208_v49 = vld [vmem:[#allocation5 + $0x500] sm:$0xff]  ;;  %315 = vmatpush.msra.mxu0 %v80_v48  ;;  %v138_v22 = vld [vmem:[#allocation5 + $0x2d0] sm:$0xff] }
  0x24   :  { %v73_v46 = vld [vmem:[#allocation5 + $0xc8] sm:$0xff]  ;;  %384 = vmatpush.msra.mxu3 %v209_v43  ;;  %v72_v52 = vld [vmem:[#allocation5 + $0xc0] sm:$0xff]  ;;  %338 = vmatpush.msra.mxu1 %v208_v49  ;;  %v266_v23 = vld [vmem:[#allocation5 + $0x6d0] sm:$0xff] }
  0x25   :  { %v201_v47 = vld [vmem:[#allocation5 + $0x4c8] sm:$0xff]  ;;  %362 = vmatpush.msra.mxu2 %v73_v46  ;;  %v200_v53 = vld [vmem:[#allocation5 + $0x4c0] sm:$0xff]  ;;  %316 = vmatpush.msra.mxu0 %v72_v52  ;;  %v115_v24 = vld [vmem:[#allocation5 + $0x218] sm:$0xff] }
  0x26   :  { %v65_v50 = vld [vmem:[#allocation5 + $0x88] sm:$0xff]  ;;  %385 = vmatpush.msra.mxu3 %v201_v47  ;;  %v64_v56 = vld [vmem:[#allocation5 + $0x80] sm:$0xff]  ;;  %339 = vmatpush.msra.mxu1 %v200_v53  ;;  %v243_v25 = vld [vmem:[#allocation5 + $0x618] sm:$0xff] }
  0x27   :  { %v193_v51 = vld [vmem:[#allocation5 + $0x488] sm:$0xff]  ;;  %363 = vmatpush.msra.mxu2 %v65_v50  ;;  %v192_v57 = vld [vmem:[#allocation5 + $0x480] sm:$0xff]  ;;  %317 = vmatpush.msra.mxu0 %v64_v56  ;;  %v130_v26 = vld [vmem:[#allocation5 + $0x290] sm:$0xff] }
  0x28   :  { %v57_v54 = vld [vmem:[#allocation5 + $0x48] sm:$0xff]  ;;  %386 = vmatpush.msra.mxu3 %v193_v51  ;;  %340 = vmatpush.msra.mxu1 %v192_v57  ;;  %v56_v62 = vld [vmem:[#allocation5 + $0x40] sm:$0xff]  ;;  %v258_v27 = vld [vmem:[#allocation5 + $0x690] sm:$0xff] }
  0x29   :  { %v185_v55 = vld [vmem:[#allocation5 + $0x448] sm:$0xff]  ;;  %364 = vmatpush.msra.mxu2 %v57_v54  ;;  %v184_v63 = vld [vmem:[#allocation5 + $0x440] sm:$0xff]  ;;  %318 = vmatpush.msra.mxu0 %v56_v62  ;;  %v107_v28 = vld [vmem:[#allocation5 + $0x1d8] sm:$0xff] }
  0x2a   :  { %v49_v58 = vld [vmem:[#allocation5 + $0x8] sm:$0xff]  ;;  %387 = vmatpush.msra.mxu3 %v185_v55  ;;  %v48_v2 = vld [vmem:[#allocation5] sm:$0xff]  ;;  %341 = vmatpush.msra.mxu1 %v184_v63  ;;  %v235_v29 = vld [vmem:[#allocation5 + $0x5d8] sm:$0xff] }
  0x2b   :  { %v177_v59 = vld [vmem:[#allocation5 + $0x408] sm:$0xff]  ;;  %365 = vmatpush.msra.mxu2 %v49_v58  ;;  %v176_v3 = vld [vmem:[#allocation5 + $0x400] sm:$0xff]  ;;  %319 = vmatpush.msra.mxu0 %v48_v2  ;;  %v122_v30 = vld [vmem:[#allocation5 + $0x250] sm:$0xff] }
  0x2c   :  { %388 = vmatpush.msra.mxu3 %v177_v59  ;;  %342 = vmatpush.msra.mxu1 %v176_v3  ;;  %v250_v31 = vld [vmem:[#allocation5 + $0x650] sm:$0xff]  ;;  %v99_v32 = vld [vmem:[#allocation5 + $0x198] sm:$0xff]  ;;  %v824_v58 = vld [vmem:[#allocation2] sm:$0xff] }
  0x2d   :  { %442 = vmatpush.msrb.mxu2 %v171_v60  ;;  %396 = vmatpush.msrb.mxu0 %v170_v6  ;;  %v227_v33 = vld [vmem:[#allocation5 + $0x598] sm:$0xff]  ;;  %v114_v34 = vld [vmem:[#allocation5 + $0x210] sm:$0xff]  ;;  %v826_v59 = vld [vmem:[#allocation2 + $0x8] sm:$0xff] }
  0x2e   :  { %465 = vmatpush.msrb.mxu3 %v299_v61  ;;  %419 = vmatpush.msrb.mxu1 %v298_v7  ;;  %v242_v35 = vld [vmem:[#allocation5 + $0x610] sm:$0xff]  ;;  %v91_v36 = vld [vmem:[#allocation5 + $0x158] sm:$0xff]  ;;  %v173_v60 = vld [vmem:[#allocation5 + $0x3e8] sm:$0xff] }
  0x2f   :  { %443 = vmatpush.msrb.mxu2 %v163_v0  ;;  %397 = vmatpush.msrb.mxu0 %v162_v10  ;;  %v219_v37 = vld [vmem:[#allocation5 + $0x558] sm:$0xff]  ;;  %v106_v38 = vld [vmem:[#allocation5 + $0x1d0] sm:$0xff]  ;;  %v301_v61 = vld [vmem:[#allocation5 + $0x7e8] sm:$0xff] }
  0x30   :  { %466 = vmatpush.msrb.mxu3 %v291_v1  ;;  %420 = vmatpush.msrb.mxu1 %v290_v11  ;;  %v234_v39 = vld [vmem:[#allocation5 + $0x5d0] sm:$0xff]  ;;  %v83_v40 = vld [vmem:[#allocation5 + $0x118] sm:$0xff]  ;;  %v165_v0 = vld [vmem:[#allocation5 + $0x3a8] sm:$0xff] }
  0x31   :  { %444 = vmatpush.msrb.mxu2 %v155_v4  ;;  %398 = vmatpush.msrb.mxu0 %v154_v14  ;;  %v211_v41 = vld [vmem:[#allocation5 + $0x518] sm:$0xff]  ;;  %v98_v42 = vld [vmem:[#allocation5 + $0x190] sm:$0xff]  ;;  %v293_v1 = vld [vmem:[#allocation5 + $0x7a8] sm:$0xff] }
  0x32   :  { %467 = vmatpush.msrb.mxu3 %v283_v5  ;;  %421 = vmatpush.msrb.mxu1 %v282_v15  ;;  %v226_v43 = vld [vmem:[#allocation5 + $0x590] sm:$0xff]  ;;  %v75_v44 = vld [vmem:[#allocation5 + $0xd8] sm:$0xff]  ;;  %v157_v4 = vld [vmem:[#allocation5 + $0x368] sm:$0xff] }
  0x33   :  { %445 = vmatpush.msrb.mxu2 %v147_v8  ;;  %399 = vmatpush.msrb.mxu0 %v146_v18  ;;  %v203_v45 = vld [vmem:[#allocation5 + $0x4d8] sm:$0xff]  ;;  %v90_v46 = vld [vmem:[#allocation5 + $0x150] sm:$0xff]  ;;  %v285_v5 = vld [vmem:[#allocation5 + $0x768] sm:$0xff] }
  0x34   :  { %468 = vmatpush.msrb.mxu3 %v275_v9  ;;  %422 = vmatpush.msrb.mxu1 %v274_v19  ;;  %v218_v47 = vld [vmem:[#allocation5 + $0x550] sm:$0xff]  ;;  %v67_v48 = vld [vmem:[#allocation5 + $0x98] sm:$0xff]  ;;  %v172_v8 = vld [vmem:[#allocation5 + $0x3e0] sm:$0xff] }
  0x35   :  { %446 = vmatpush.msrb.mxu2 %v139_v12  ;;  %400 = vmatpush.msrb.mxu0 %v138_v22  ;;  %v195_v49 = vld [vmem:[#allocation5 + $0x498] sm:$0xff]  ;;  %v82_v50 = vld [vmem:[#allocation5 + $0x110] sm:$0xff]  ;;  %v300_v9 = vld [vmem:[#allocation5 + $0x7e0] sm:$0xff] }
  0x36   :  { %469 = vmatpush.msrb.mxu3 %v267_v13  ;;  %423 = vmatpush.msrb.mxu1 %v266_v23  ;;  %v210_v51 = vld [vmem:[#allocation5 + $0x510] sm:$0xff]  ;;  %v59_v52 = vld [vmem:[#allocation5 + $0x58] sm:$0xff]  ;;  %v149_v10 = vld [vmem:[#allocation5 + $0x328] sm:$0xff] }
  0x37   :  { %447 = vmatpush.msrb.mxu2 %v131_v16  ;;  %401 = vmatpush.msrb.mxu0 %v130_v26  ;;  %v187_v53 = vld [vmem:[#allocation5 + $0x458] sm:$0xff]  ;;  %v74_v54 = vld [vmem:[#allocation5 + $0xd0] sm:$0xff]  ;;  %v277_v11 = vld [vmem:[#allocation5 + $0x728] sm:$0xff] }
  0x38   :  { %470 = vmatpush.msrb.mxu3 %v259_v17  ;;  %424 = vmatpush.msrb.mxu1 %v258_v27  ;;  %v202_v55 = vld [vmem:[#allocation5 + $0x4d0] sm:$0xff]  ;;  %v51_v56 = vld [vmem:[#allocation5 + $0x18] sm:$0xff]  ;;  %v164_v12 = vld [vmem:[#allocation5 + $0x3a0] sm:$0xff] }
  0x39   :  { %448 = vmatpush.msrb.mxu2 %v123_v20  ;;  %402 = vmatpush.msrb.mxu0 %v122_v30  ;;  %v179_v57 = vld [vmem:[#allocation5 + $0x418] sm:$0xff]  ;;  %v66_v62 = vld [vmem:[#allocation5 + $0x90] sm:$0xff]  ;;  %v292_v13 = vld [vmem:[#allocation5 + $0x7a0] sm:$0xff] }
  0x3a   :  { %471 = vmatpush.msrb.mxu3 %v251_v21  ;;  %425 = vmatpush.msrb.mxu1 %v250_v31  ;;  %v194_v63 = vld [vmem:[#allocation5 + $0x490] sm:$0xff]  ;;  %v141_v14 = vld [vmem:[#allocation5 + $0x2e8] sm:$0xff]  ;;  %v156_v16 = vld [vmem:[#allocation5 + $0x360] sm:$0xff] }
  0x3b   :  { %449 = vmatpush.msrb.mxu2 %v115_v24  ;;  %403 = vmatpush.msrb.mxu0 %v114_v34  ;;  %v58_v2 = vld [vmem:[#allocation5 + $0x50] sm:$0xff]  ;;  %v269_v15 = vld [vmem:[#allocation5 + $0x6e8] sm:$0xff]  ;;  %v284_v17 = vld [vmem:[#allocation5 + $0x760] sm:$0xff] }
  0x3c   :  { %472 = vmatpush.msrb.mxu3 %v243_v25  ;;  %426 = vmatpush.msrb.mxu1 %v242_v35  ;;  %v186_v3 = vld [vmem:[#allocation5 + $0x450] sm:$0xff]  ;;  %v133_v18 = vld [vmem:[#allocation5 + $0x2a8] sm:$0xff]  ;;  %v148_v20 = vld [vmem:[#allocation5 + $0x320] sm:$0xff] }
  0x3d   :  { %450 = vmatpush.msrb.mxu2 %v107_v28  ;;  %404 = vmatpush.msrb.mxu0 %v106_v38  ;;  %v50_v6 = vld [vmem:[#allocation5 + $0x10] sm:$0xff]  ;;  %v261_v19 = vld [vmem:[#allocation5 + $0x6a8] sm:$0xff]  ;;  %v276_v21 = vld [vmem:[#allocation5 + $0x720] sm:$0xff] }
  0x3e   :  { %473 = vmatpush.msrb.mxu3 %v235_v29  ;;  %427 = vmatpush.msrb.mxu1 %v234_v39  ;;  %v178_v7 = vld [vmem:[#allocation5 + $0x410] sm:$0xff]  ;;  %v125_v22 = vld [vmem:[#allocation5 + $0x268] sm:$0xff]  ;;  %v140_v24 = vld [vmem:[#allocation5 + $0x2e0] sm:$0xff] }
  0x3f   :  { %451 = vmatpush.msrb.mxu2 %v99_v32  ;;  %405 = vmatpush.msrb.mxu0 %v98_v42  ;;  %v253_v23 = vld [vmem:[#allocation5 + $0x668] sm:$0xff]  ;;  %v268_v25 = vld [vmem:[#allocation5 + $0x6e0] sm:$0xff] }
  0x40   :  { %474 = vmatpush.msrb.mxu3 %v227_v33  ;;  %428 = vmatpush.msrb.mxu1 %v226_v43  ;;  %v117_v26 = vld [vmem:[#allocation5 + $0x228] sm:$0xff]  ;;  %v132_v28 = vld [vmem:[#allocation5 + $0x2a0] sm:$0xff] }
  0x41   :  { %452 = vmatpush.msrb.mxu2 %v91_v36  ;;  %406 = vmatpush.msrb.mxu0 %v90_v46  ;;  %v245_v27 = vld [vmem:[#allocation5 + $0x628] sm:$0xff]  ;;  %v260_v29 = vld [vmem:[#allocation5 + $0x6a0] sm:$0xff] }
  0x42   :  { %475 = vmatpush.msrb.mxu3 %v219_v37  ;;  %429 = vmatpush.msrb.mxu1 %v218_v47  ;;  %v109_v30 = vld [vmem:[#allocation5 + $0x1e8] sm:$0xff]  ;;  %v124_v32 = vld [vmem:[#allocation5 + $0x260] sm:$0xff] }
  0x43   :  { %453 = vmatpush.msrb.mxu2 %v83_v40  ;;  %407 = vmatpush.msrb.mxu0 %v82_v50  ;;  %v237_v31 = vld [vmem:[#allocation5 + $0x5e8] sm:$0xff]  ;;  %v252_v33 = vld [vmem:[#allocation5 + $0x660] sm:$0xff]  ;;  %v832_v40 = vld [vmem:[#allocation2 + $0x10] sm:$0xff] }
  0x44   :  { %476 = vmatpush.msrb.mxu3 %v211_v41  ;;  %430 = vmatpush.msrb.mxu1 %v210_v51  ;;  %v101_v34 = vld [vmem:[#allocation5 + $0x1a8] sm:$0xff]  ;;  %v116_v36 = vld [vmem:[#allocation5 + $0x220] sm:$0xff]  ;;  %v834_v41 = vld [vmem:[#allocation2 + $0x18] sm:$0xff] }
  0x45   :  { %454 = vmatpush.msrb.mxu2 %v75_v44  ;;  %408 = vmatpush.msrb.mxu0 %v74_v54  ;;  %v229_v35 = vld [vmem:[#allocation5 + $0x5a8] sm:$0xff]  ;;  %v244_v37 = vld [vmem:[#allocation5 + $0x620] sm:$0xff] }
  0x46   :  { %477 = vmatpush.msrb.mxu3 %v203_v45  ;;  %431 = vmatpush.msrb.mxu1 %v202_v55  ;;  %v93_v38 = vld [vmem:[#allocation5 + $0x168] sm:$0xff]  ;;  %v108_v42 = vld [vmem:[#allocation5 + $0x1e0] sm:$0xff] }
  0x47   :  { %455 = vmatpush.msrb.mxu2 %v67_v48  ;;  %389 = vmatmul.f32.vlgmr.msra.gmra.mxu3 %v826_v59  ;;  %v221_v39 = vld [vmem:[#allocation5 + $0x568] sm:$0xff]  ;;  %v236_v43 = vld [vmem:[#allocation5 + $0x5e0] sm:$0xff] }
  0x48   :  { %478 = vmatpush.msrb.mxu3 %v195_v49  ;;  %366 = vmatmul.f32.vlgmr.msra.gmra.mxu2 %v824_v58  ;;  %v85_v44 = vld [vmem:[#allocation5 + $0x128] sm:$0xff]  ;;  %v100_v46 = vld [vmem:[#allocation5 + $0x1a0] sm:$0xff] }
  0x49   :  { %456 = vmatpush.msrb.mxu2 %v59_v52  ;;  %409 = vmatpush.msrb.mxu0 %v66_v62  ;;  %v213_v45 = vld [vmem:[#allocation5 + $0x528] sm:$0xff]  ;;  %v228_v47 = vld [vmem:[#allocation5 + $0x5a0] sm:$0xff] }
  0x4a   :  { %479 = vmatpush.msrb.mxu3 %v187_v53  ;;  %432 = vmatpush.msrb.mxu1 %v194_v63  ;;  %v77_v48 = vld [vmem:[#allocation5 + $0xe8] sm:$0xff]  ;;  %v92_v50 = vld [vmem:[#allocation5 + $0x160] sm:$0xff] }
  0x4b   :  { %457 = vmatpush.msrb.mxu2 %v51_v56  ;;  %410 = vmatpush.msrb.mxu0 %v58_v2  ;;  %v205_v49 = vld [vmem:[#allocation5 + $0x4e8] sm:$0xff]  ;;  %v220_v51 = vld [vmem:[#allocation5 + $0x560] sm:$0xff] }
  0x4c   :  { %480 = vmatpush.msrb.mxu3 %v179_v57  ;;  %433 = vmatpush.msrb.mxu1 %v186_v3  ;;  %v69_v52 = vld [vmem:[#allocation5 + $0xa8] sm:$0xff]  ;;  %v84_v54 = vld [vmem:[#allocation5 + $0x120] sm:$0xff] }
  0x4d   :  { %534 = vmatpush.msra.mxu2 %v173_v60  ;;  %411 = vmatpush.msrb.mxu0 %v50_v6  ;;  %v197_v53 = vld [vmem:[#allocation5 + $0x4a8] sm:$0xff]  ;;  %v212_v55 = vld [vmem:[#allocation5 + $0x520] sm:$0xff] }
  0x4e   :  { %557 = vmatpush.msra.mxu3 %v301_v61  ;;  %434 = vmatpush.msrb.mxu1 %v178_v7  ;;  %v61_v56 = vld [vmem:[#allocation5 + $0x68] sm:$0xff]  ;;  %v76_v60 = vld [vmem:[#allocation5 + $0xe0] sm:$0xff] }
  0x4f   :  { %535 = vmatpush.msra.mxu2 %v165_v0  ;;  %320 = vmatmul.f32.vlgmr.msra.gmra.mxu0 %v824_v58  ;;  %v189_v57 = vld [vmem:[#allocation5 + $0x468] sm:$0xff]  ;;  %v204_v61 = vld [vmem:[#allocation5 + $0x4e0] sm:$0xff]  ;;  %v175_v0 = vld [vmem:[#allocation5 + $0x3f8] sm:$0xff] }
  0x50   :  { %558 = vmatpush.msra.mxu3 %v293_v1  ;;  %343 = vmatmul.f32.vlgmr.msra.gmra.mxu1 %v826_v59  ;;  %v53_v62 = vld [vmem:[#allocation5 + $0x28] sm:$0xff]  ;;  %v303_v1 = vld [vmem:[#allocation5 + $0x7f8] sm:$0xff]  ;;  %v68_v2 = vld [vmem:[#allocation5 + $0xa0] sm:$0xff] }
  0x51   :  { %536 = vmatpush.msra.mxu2 %v157_v4  ;;  %488 = vmatpush.msra.mxu0 %v172_v8  ;;  %v181_v63 = vld [vmem:[#allocation5 + $0x428] sm:$0xff]  ;;  %v196_v3 = vld [vmem:[#allocation5 + $0x4a0] sm:$0xff]  ;;  %v167_v4 = vld [vmem:[#allocation5 + $0x3b8] sm:$0xff] }
  0x52   :  { %559 = vmatpush.msra.mxu3 %v285_v5  ;;  %511 = vmatpush.msra.mxu1 %v300_v9  ;;  %v295_v5 = vld [vmem:[#allocation5 + $0x7b8] sm:$0xff]  ;;  %v60_v6 = vld [vmem:[#allocation5 + $0x60] sm:$0xff] }
  0x53   :  { %537 = vmatpush.msra.mxu2 %v149_v10  ;;  %489 = vmatpush.msra.mxu0 %v164_v12  ;;  %v188_v7 = vld [vmem:[#allocation5 + $0x460] sm:$0xff]  ;;  %v159_v8 = vld [vmem:[#allocation5 + $0x378] sm:$0xff]  ;;  %v174_v12 = vld [vmem:[#allocation5 + $0x3f0] sm:$0xff] }
  0x54   :  { %560 = vmatpush.msra.mxu3 %v277_v11  ;;  %512 = vmatpush.msra.mxu1 %v292_v13  ;;  %v287_v9 = vld [vmem:[#allocation5 + $0x778] sm:$0xff]  ;;  %v52_v10 = vld [vmem:[#allocation5 + $0x20] sm:$0xff]  ;;  %v302_v13 = vld [vmem:[#allocation5 + $0x7f0] sm:$0xff] }
  0x55   :  { %538 = vmatpush.msra.mxu2 %v141_v14  ;;  %490 = vmatpush.msra.mxu0 %v156_v16  ;;  %v180_v11 = vld [vmem:[#allocation5 + $0x420] sm:$0xff]  ;;  %v151_v14 = vld [vmem:[#allocation5 + $0x338] sm:$0xff]  ;;  %v166_v16 = vld [vmem:[#allocation5 + $0x3b0] sm:$0xff] }
  0x56   :  { %561 = vmatpush.msra.mxu3 %v269_v15  ;;  %513 = vmatpush.msra.mxu1 %v284_v17  ;;  %v279_v15 = vld [vmem:[#allocation5 + $0x738] sm:$0xff]  ;;  %v294_v17 = vld [vmem:[#allocation5 + $0x7b0] sm:$0xff] }
  0x57   :  { %539 = vmatpush.msra.mxu2 %v133_v18  ;;  %491 = vmatpush.msra.mxu0 %v148_v20  ;;  %v143_v18 = vld [vmem:[#allocation5 + $0x2f8] sm:$0xff]  ;;  %v158_v20 = vld [vmem:[#allocation5 + $0x370] sm:$0xff] }
  0x58   :  { %562 = vmatpush.msra.mxu3 %v261_v19  ;;  %514 = vmatpush.msra.mxu1 %v276_v21  ;;  %v271_v19 = vld [vmem:[#allocation5 + $0x6f8] sm:$0xff]  ;;  %v286_v21 = vld [vmem:[#allocation5 + $0x770] sm:$0xff] }
  0x59   :  { %540 = vmatpush.msra.mxu2 %v125_v22  ;;  %492 = vmatpush.msra.mxu0 %v140_v24  ;;  %v135_v22 = vld [vmem:[#allocation5 + $0x2b8] sm:$0xff]  ;;  %v150_v24 = vld [vmem:[#allocation5 + $0x330] sm:$0xff] }
  0x5a   :  { %563 = vmatpush.msra.mxu3 %v253_v23  ;;  %515 = vmatpush.msra.mxu1 %v268_v25  ;;  %v263_v23 = vld [vmem:[#allocation5 + $0x6b8] sm:$0xff]  ;;  %v278_v25 = vld [vmem:[#allocation5 + $0x730] sm:$0xff] }
  0x5b   :  { %541 = vmatpush.msra.mxu2 %v117_v26  ;;  %493 = vmatpush.msra.mxu0 %v132_v28  ;;  %v127_v26 = vld [vmem:[#allocation5 + $0x278] sm:$0xff]  ;;  %v142_v28 = vld [vmem:[#allocation5 + $0x2f0] sm:$0xff] }
  0x5c   :  { %564 = vmatpush.msra.mxu3 %v245_v27  ;;  %516 = vmatpush.msra.mxu1 %v260_v29  ;;  %v255_v27 = vld [vmem:[#allocation5 + $0x678] sm:$0xff]  ;;  %v270_v29 = vld [vmem:[#allocation5 + $0x6f0] sm:$0xff] }
  0x5d   :  { %542 = vmatpush.msra.mxu2 %v109_v30  ;;  %494 = vmatpush.msra.mxu0 %v124_v32  ;;  %v119_v30 = vld [vmem:[#allocation5 + $0x238] sm:$0xff]  ;;  %v134_v32 = vld [vmem:[#allocation5 + $0x2b0] sm:$0xff] }
  0x5e   :  { %565 = vmatpush.msra.mxu3 %v237_v31  ;;  %517 = vmatpush.msra.mxu1 %v252_v33  ;;  %v247_v31 = vld [vmem:[#allocation5 + $0x638] sm:$0xff]  ;;  %v262_v33 = vld [vmem:[#allocation5 + $0x6b0] sm:$0xff] }
  0x5f   :  { %543 = vmatpush.msra.mxu2 %v101_v34  ;;  %495 = vmatpush.msra.mxu0 %v116_v36  ;;  %v111_v34 = vld [vmem:[#allocation5 + $0x1f8] sm:$0xff]  ;;  %v126_v36 = vld [vmem:[#allocation5 + $0x270] sm:$0xff] }
  0x60   :  { %566 = vmatpush.msra.mxu3 %v229_v35  ;;  %518 = vmatpush.msra.mxu1 %v244_v37  ;;  %v239_v35 = vld [vmem:[#allocation5 + $0x5f8] sm:$0xff]  ;;  %v254_v37 = vld [vmem:[#allocation5 + $0x670] sm:$0xff] }
  0x61   :  { %544 = vmatpush.msra.mxu2 %v93_v38  ;;  %392 = vmatmul.f32.gmra.mxu3 %v834_v41  ;;  %v103_v38 = vld [vmem:[#allocation5 + $0x1b8] sm:$0xff] }
  0x62   :  { %567 = vmatpush.msra.mxu3 %v221_v39  ;;  %369 = vmatmul.f32.gmra.mxu2 %v832_v40  ;;  %v231_v39 = vld [vmem:[#allocation5 + $0x5b8] sm:$0xff] }
  0x63   :  { %496 = vmatpush.msra.mxu0 %v108_v42  ;;  %519 = vmatpush.msra.mxu1 %v236_v43  ;;  %v118_v42 = vld [vmem:[#allocation5 + $0x230] sm:$0xff] }
  0x64   :  { %545 = vmatpush.msra.mxu2 %v85_v44  ;;  %568 = vmatpush.msra.mxu3 %v213_v45  ;;  %v246_v43 = vld [vmem:[#allocation5 + $0x630] sm:$0xff]  ;;  %v95_v44 = vld [vmem:[#allocation5 + $0x178] sm:$0xff] }
  0x65   :  { %497 = vmatpush.msra.mxu0 %v100_v46  ;;  %520 = vmatpush.msra.mxu1 %v228_v47  ;;  %v223_v45 = vld [vmem:[#allocation5 + $0x578] sm:$0xff]  ;;  %v110_v46 = vld [vmem:[#allocation5 + $0x1f0] sm:$0xff] }
  0x66   :  { %546 = vmatpush.msra.mxu2 %v77_v48  ;;  %569 = vmatpush.msra.mxu3 %v205_v49  ;;  %v238_v47 = vld [vmem:[#allocation5 + $0x5f0] sm:$0xff]  ;;  %v87_v48 = vld [vmem:[#allocation5 + $0x138] sm:$0xff] }
  0x67   :  { %498 = vmatpush.msra.mxu0 %v92_v50  ;;  %521 = vmatpush.msra.mxu1 %v220_v51  ;;  %v215_v49 = vld [vmem:[#allocation5 + $0x538] sm:$0xff]  ;;  %v102_v50 = vld [vmem:[#allocation5 + $0x1b0] sm:$0xff] }
  0x68   :  { %547 = vmatpush.msra.mxu2 %v69_v52  ;;  %570 = vmatpush.msra.mxu3 %v197_v53  ;;  %v230_v51 = vld [vmem:[#allocation5 + $0x5b0] sm:$0xff]  ;;  %v79_v52 = vld [vmem:[#allocation5 + $0xf8] sm:$0xff] }
  0x69   :  { %323 = vmatmul.f32.gmra.mxu0 %v832_v40  ;;  %346 = vmatmul.f32.gmra.mxu1 %v834_v41  ;;  %v207_v53 = vld [vmem:[#allocation5 + $0x4f8] sm:$0xff] }
  0x6a   :  { %499 = vmatpush.msra.mxu0 %v84_v54  ;;  %522 = vmatpush.msra.mxu1 %v212_v55  ;;  %v94_v54 = vld [vmem:[#allocation5 + $0x170] sm:$0xff] }
  0x6b   :  { %548 = vmatpush.msra.mxu2 %v61_v56  ;;  %571 = vmatpush.msra.mxu3 %v189_v57  ;;  %v222_v55 = vld [vmem:[#allocation5 + $0x570] sm:$0xff]  ;;  %v71_v56 = vld [vmem:[#allocation5 + $0xb8] sm:$0xff] }
  0x6c   :  { %458 = vmatmul.f32.vlgmr.msrb.gmra.mxu2 %v824_v58  ;;  %481 = vmatmul.f32.vlgmr.msrb.gmra.mxu3 %v826_v59  ;;  %v199_v57 = vld [vmem:[#allocation5 + $0x4b8] sm:$0xff] }
  0x6d   :  { %500 = vmatpush.msra.mxu0 %v76_v60  ;;  %523 = vmatpush.msra.mxu1 %v204_v61  ;;  %v86_v60 = vld [vmem:[#allocation5 + $0x130] sm:$0xff] }
  0x6e   :  { %549 = vmatpush.msra.mxu2 %v53_v62  ;;  %572 = vmatpush.msra.mxu3 %v181_v63  ;;  %v214_v61 = vld [vmem:[#allocation5 + $0x530] sm:$0xff]  ;;  %v63_v62 = vld [vmem:[#allocation5 + $0x78] sm:$0xff] }
  0x6f   :  { %501 = vmatpush.msra.mxu0 %v68_v2  ;;  %524 = vmatpush.msra.mxu1 %v196_v3  ;;  %v191_v63 = vld [vmem:[#allocation5 + $0x478] sm:$0xff] }
  0x70   :  { %626 = vmatpush.msrb.mxu2 %v175_v0  ;;  %649 = vmatpush.msrb.mxu3 %v303_v1  ;;  %v78_v0 = vld [vmem:[#allocation5 + $0xf0] sm:$0xff]  ;;  %v55_v2 = vld [vmem:[#allocation5 + $0x38] sm:$0xff] }
  0x71   :  { %502 = vmatpush.msra.mxu0 %v60_v6  ;;  %525 = vmatpush.msra.mxu1 %v188_v7  ;;  %v206_v1 = vld [vmem:[#allocation5 + $0x4f0] sm:$0xff]  ;;  %v183_v3 = vld [vmem:[#allocation5 + $0x438] sm:$0xff] }
  0x72   :  { %627 = vmatpush.msrb.mxu2 %v167_v4  ;;  %650 = vmatpush.msrb.mxu3 %v295_v5  ;;  %v70_v4 = vld [vmem:[#allocation5 + $0xb0] sm:$0xff] }
  0x73   :  { %412 = vmatmul.f32.vlgmr.msrb.gmra.mxu0 %v824_v58  ;;  %435 = vmatmul.f32.vlgmr.msrb.gmra.mxu1 %v826_v59  ;;  %v198_v5 = vld [vmem:[#allocation5 + $0x4b0] sm:$0xff] }
  0x74   :  { %628 = vmatpush.msrb.mxu2 %v159_v8  ;;  %651 = vmatpush.msrb.mxu3 %v287_v9  ;;  %v62_v6 = vld [vmem:[#allocation5 + $0x70] sm:$0xff] }
  0x75   :  { %503 = vmatpush.msra.mxu0 %v52_v10  ;;  %526 = vmatpush.msra.mxu1 %v180_v11  ;;  %v190_v7 = vld [vmem:[#allocation5 + $0x470] sm:$0xff] }
  0x76   :  { %629 = vmatpush.msrb.mxu2 %v151_v14  ;;  %652 = vmatpush.msrb.mxu3 %v279_v15  ;;  %v54_v8 = vld [vmem:[#allocation5 + $0x30] sm:$0xff] }
  0x77   :  { %580 = vmatpush.msrb.mxu0 %v174_v12  ;;  %603 = vmatpush.msrb.mxu1 %v302_v13  ;;  %v182_v9 = vld [vmem:[#allocation5 + $0x430] sm:$0xff] }
  0x78   :  { %461 = vmatmul.f32.gmra.mxu2 %v832_v40  ;;  %484 = vmatmul.f32.gmra.mxu3 %v834_v41 }
  0x79   :  { %581 = vmatpush.msrb.mxu0 %v166_v16  ;;  %604 = vmatpush.msrb.mxu1 %v294_v17 }
  0x7a   :  { %630 = vmatpush.msrb.mxu2 %v143_v18  ;;  %653 = vmatpush.msrb.mxu3 %v271_v19 }
  0x7b   :  { %582 = vmatpush.msrb.mxu0 %v158_v20  ;;  %605 = vmatpush.msrb.mxu1 %v286_v21 }
  0x7c   :  { %631 = vmatpush.msrb.mxu2 %v135_v22  ;;  %654 = vmatpush.msrb.mxu3 %v263_v23 }
  0x7d   :  { %583 = vmatpush.msrb.mxu0 %v150_v24  ;;  %606 = vmatpush.msrb.mxu1 %v278_v25 }
  0x7e   :  { %632 = vmatpush.msrb.mxu2 %v127_v26  ;;  %655 = vmatpush.msrb.mxu3 %v255_v27 }
  0x7f   :  { %415 = vmatmul.f32.gmra.mxu0 %v832_v40  ;;  %438 = vmatmul.f32.gmra.mxu1 %v834_v41 }
  0x80   :  { %584 = vmatpush.msrb.mxu0 %v142_v28  ;;  %607 = vmatpush.msrb.mxu1 %v270_v29 }
  0x81   :  { %633 = vmatpush.msrb.mxu2 %v119_v30  ;;  %656 = vmatpush.msrb.mxu3 %v247_v31 }
  0x82   :  { %550 = vmatmul.f32.vlgmr.msra.gmra.mxu2 %v824_v58  ;;  %573 = vmatmul.f32.vlgmr.msra.gmra.mxu3 %v826_v59 }
  0x83   :  { %585 = vmatpush.msrb.mxu0 %v134_v32  ;;  %608 = vmatpush.msrb.mxu1 %v262_v33 }
  0x84   :  { %634 = vmatpush.msrb.mxu2 %v111_v34  ;;  %657 = vmatpush.msrb.mxu3 %v239_v35 }
  0x85   :  { %586 = vmatpush.msrb.mxu0 %v126_v36  ;;  %609 = vmatpush.msrb.mxu1 %v254_v37 }
  0x86   :  { %635 = vmatpush.msrb.mxu2 %v103_v38  ;;  %658 = vmatpush.msrb.mxu3 %v231_v39 }
  0x87   :  { %587 = vmatpush.msrb.mxu0 %v118_v42  ;;  %610 = vmatpush.msrb.mxu1 %v246_v43 }
  0x88   :  { %636 = vmatpush.msrb.mxu2 %v95_v44  ;;  %659 = vmatpush.msrb.mxu3 %v223_v45 }
  0x89   :  { %504 = vmatmul.f32.vlgmr.msra.gmra.mxu0 %v824_v58  ;;  %527 = vmatmul.f32.vlgmr.msra.gmra.mxu1 %v826_v59 }
  0x8a   :  { %588 = vmatpush.msrb.mxu0 %v110_v46  ;;  %611 = vmatpush.msrb.mxu1 %v238_v47 }
  0x8b   :  { %637 = vmatpush.msrb.mxu2 %v87_v48  ;;  %660 = vmatpush.msrb.mxu3 %v215_v49 }
  0x8c   :  { %553 = vmatmul.f32.gmra.mxu2 %v832_v40  ;;  %576 = vmatmul.f32.gmra.mxu3 %v834_v41 }
  0x8d   :  { %589 = vmatpush.msrb.mxu0 %v102_v50  ;;  %612 = vmatpush.msrb.mxu1 %v230_v51 }
  0x8e   :  { %638 = vmatpush.msrb.mxu2 %v79_v52  ;;  %661 = vmatpush.msrb.mxu3 %v207_v53 }
  0x8f   :  { %590 = vmatpush.msrb.mxu0 %v94_v54  ;;  %613 = vmatpush.msrb.mxu1 %v222_v55 }
  0x90   :  { %639 = vmatpush.msrb.mxu2 %v71_v56  ;;  %662 = vmatpush.msrb.mxu3 %v199_v57 }
  0x91   :  { %591 = vmatpush.msrb.mxu0 %v86_v60  ;;  %614 = vmatpush.msrb.mxu1 %v214_v61 }
  0x92   :  { %640 = vmatpush.msrb.mxu2 %v63_v62  ;;  %663 = vmatpush.msrb.mxu3 %v191_v63 }
  0x93   :  { %507 = vmatmul.f32.gmra.mxu0 %v832_v40  ;;  %530 = vmatmul.f32.gmra.mxu1 %v834_v41 }
  0x94   :  { %592 = vmatpush.msrb.mxu0 %v78_v0  ;;  %615 = vmatpush.msrb.mxu1 %v206_v1 }
  0x95   :  { %641 = vmatpush.msrb.mxu2 %v55_v2  ;;  %664 = vmatpush.msrb.mxu3 %v183_v3 }
  0x96   :  { %642 = vmatmul.f32.vlgmr.msrb.gmra.mxu2 %v824_v58  ;;  %665 = vmatmul.f32.vlgmr.msrb.gmra.mxu3 %v826_v59 }
  0x97   :  { %593 = vmatpush.msrb.mxu0 %v70_v4  ;;  %616 = vmatpush.msrb.mxu1 %v198_v5 }
  0x99   :  { %594 = vmatpush.msrb.mxu0 %v62_v6  ;;  %617 = vmatpush.msrb.mxu1 %v190_v7 }
  0x9b   :  { %595 = vmatpush.msrb.mxu0 %v54_v8  ;;  %618 = vmatpush.msrb.mxu1 %v182_v9 }
  0x9c   :  { %596 = vmatmul.f32.vlgmr.msrb.gmra.mxu0 %v824_v58  ;;  %619 = vmatmul.f32.vlgmr.msrb.gmra.mxu1 %v826_v59 }
  0x9e   :  { %645 = vmatmul.f32.gmra.mxu2 %v832_v40  ;;  %668 = vmatmul.f32.gmra.mxu3 %v834_v41 }
  0xa4   :  { %599 = vmatmul.f32.gmra.mxu0 %v832_v40  ;;  %622 = vmatmul.f32.gmra.mxu1 %v834_v41 }
  0xca   :  { %v390_v11 = vpop.f32.mrf.mxu3 }
  0xcb   :  { %v367_v10 = vpop.f32.mrf.mxu2 }
  0xcc   :  { %v321_v12 = vpop.f32.mrf.mxu0  ;;  %v391_v14 = vadd.f32 %v390_v11, %v367_v10 }
  0xcd   :  { %v344_v13 = vpop.f32.mrf.mxu1 }
  0xce   :  { %v345_v15 = vadd.f32 %v344_v13, %v321_v12  ;;  %673 = vst [vmem:[#allocation7 + $0x8] sm:$0xff] %v391_v14 }
  0xd0   :  { %672 = vst [vmem:[#allocation7] sm:$0xff] %v345_v15 }
  0xe4   :  { %v393_v58 = vpop.f32.mrf.mxu3 }
  0xe5   :  { %v370_v16 = vpop.f32.mrf.mxu2 }
  0xe6   :  { %v324_v17 = vpop.f32.mrf.mxu0  ;;  %v347_v59 = vpop.f32.mrf.mxu1  ;;  %v394_v18 = vadd.f32 %v393_v58, %v370_v16 }
  0xe7   :  { %v348_v19 = vadd.f32 %v347_v59, %v324_v17 }
  0xe8   :  { %681 = vst [vmem:[#allocation7 + $0x48] sm:$0xff] %v394_v18 }
  0xe9   :  { %680 = vst [vmem:[#allocation7 + $0x40] sm:$0xff] %v348_v19 }
  0xef   :  { %v459_v20 = vpop.f32.mrf.mxu2  ;;  %v482_v40 = vpop.f32.mrf.mxu3 }
  0xf0   :  { %v483_v21 = vadd.f32 %v482_v40, %v459_v20  ;;  %v413_v41 = vpop.f32.mrf.mxu0  ;;  %v436_v22 = vpop.f32.mrf.mxu1 }
  0xf1   :  { %v437_v23 = vadd.f32 %v436_v22, %v413_v41 }
  0xf2   :  { %675 = vst [vmem:[#allocation7 + $0x18] sm:$0xff] %v483_v21 }
  0xf3   :  { %674 = vst [vmem:[#allocation7 + $0x10] sm:$0xff] %v437_v23 }
  0xfb   :  { %v462_v24 = vpop.f32.mrf.mxu2  ;;  %v485_v25 = vpop.f32.mrf.mxu3 }
  0xfc   :  { %v416_v26 = vpop.f32.mrf.mxu0  ;;  %v439_v27 = vpop.f32.mrf.mxu1  ;;  %v486_v28 = vadd.f32 %v485_v25, %v462_v24 }
  0xfd   :  { %v440_v29 = vadd.f32 %v439_v27, %v416_v26 }
  0xfe   :  { %683 = vst [vmem:[#allocation7 + $0x58] sm:$0xff] %v486_v28 }
  0xff   :  { %682 = vst [vmem:[#allocation7 + $0x50] sm:$0xff] %v440_v29 }
 0x105   :  { %v551_v30 = vpop.f32.mrf.mxu2  ;;  %v574_v31 = vpop.f32.mrf.mxu3 }
 0x106   :  { %v505_v32 = vpop.f32.mrf.mxu0  ;;  %v528_v33 = vpop.f32.mrf.mxu1  ;;  %v575_v34 = vadd.f32 %v574_v31, %v551_v30 }
 0x107   :  { %v529_v35 = vadd.f32 %v528_v33, %v505_v32 }
 0x108   :  { %677 = vst [vmem:[#allocation7 + $0x28] sm:$0xff] %v575_v34 }
 0x109   :  { %676 = vst [vmem:[#allocation7 + $0x20] sm:$0xff] %v529_v35 }
 0x10f   :  { %v554_v36 = vpop.f32.mrf.mxu2  ;;  %v577_v37 = vpop.f32.mrf.mxu3 }
 0x110   :  { %v508_v38 = vpop.f32.mrf.mxu0  ;;  %v531_v39 = vpop.f32.mrf.mxu1  ;;  %v578_v42 = vadd.f32 %v577_v37, %v554_v36 }
 0x111   :  { %v532_v43 = vadd.f32 %v531_v39, %v508_v38 }
 0x112   :  { %685 = vst [vmem:[#allocation7 + $0x68] sm:$0xff] %v578_v42 }
 0x113   :  { %684 = vst [vmem:[#allocation7 + $0x60] sm:$0xff] %v532_v43 }
 0x119   :  { %v597_v44 = vpop.f32.mrf.mxu0  ;;  %v620_v45 = vpop.f32.mrf.mxu1 }
 0x11a   :  { %v621_v46 = vadd.f32 %v620_v45, %v597_v44  ;;  %v643_v47 = vpop.f32.mrf.mxu2  ;;  %v666_v48 = vpop.f32.mrf.mxu3 }
 0x11b   :  { %v667_v49 = vadd.f32 %v666_v48, %v643_v47 }
 0x11c   :  { %678 = vst [vmem:[#allocation7 + $0x30] sm:$0xff] %v621_v46 }
 0x11d   :  { %679 = vst [vmem:[#allocation7 + $0x38] sm:$0xff] %v667_v49 }
 0x121   :  { %v600_v50 = vpop.f32.mrf.mxu0  ;;  %v623_v51 = vpop.f32.mrf.mxu1 }
 0x122   :  { %v624_v52 = vadd.f32 %v623_v51, %v600_v50  ;;  %v646_v53 = vpop.f32.mrf.mxu2  ;;  %v669_v54 = vpop.f32.mrf.mxu3 }
 0x123   :  { %v670_v55 = vadd.f32 %v669_v54, %v646_v53 }
 0x124   :  { %686 = vst [vmem:[#allocation7 + $0x70] sm:$0xff] %v624_v52 }
 0x125   :  { %687 = vst [vmem:[#allocation7 + $0x78] sm:$0xff] %v670_v55 }
 0x126   :  { %700 = dma.vmem_to_hbm [thread:$0]  %s693_s1, 2048, %s695_s25, [#allocation4], %s797_s21, %s797_s21, %s798_s22  }
 0x127   :  { %791 = dma.done.wait [#allocation4], 2048  }
 0x128   :  { %792 = vsyncadd [#allocation4], 4294965248 }
 0x129   :  { %705 = vsyncpa [#allocation3], 1 }
 0x12a   :  { %706 = vsyncpa [#allocation6], 1 }
 0x12b   :  { %707 = vsyncpa [#allocation4], 1 }

</bundles_post_ra>
